<compile_context>
chip_gen: v7x
topology: tpu7x:2x2x1
jax: 0.10.0
libtpu: 0.0.40
codegen_flags: <defaults>
</compile_context>

<pallas_src>
import functools
import math

import jax
import jax.numpy as jnp
from jax.experimental import pallas as pl
from jax.experimental.pallas import tpu as pltpu


# ---------------------------------------------------------------------------
# Fused kernel: projections + multi-head attention + out_proj + residual,
# one batch block per program.
# ---------------------------------------------------------------------------
def _layer_norm_f32(z, gamma, beta, eps=1e-5):
    mu = jnp.mean(z, axis=-1, keepdims=True)
    zc = z - mu
    var = jnp.mean(zc * zc, axis=-1, keepdims=True)
    return zc * jax.lax.rsqrt(var + eps) * gamma + beta


def fused_attention_sampler_kernel(
        pq_ref, pk_ref, pv_ref,            # im2col patches: (Bt, N, P)
        wc_ref, bc_ref,                     # stacked conv weights: (3, P, Dout), (3, Dout)
        g_ref, bg_ref,                      # stacked LayerNorm gamma/beta: (3, Dout)
        wl_ref, bl_ref,                     # stacked Linear weights: (3, Dout, Di), (3, Di)
        wo_ref, bo_ref,                     # out_proj: (Di, Dout), (1, Dout)
        o_ref,                              # output: (Bt, N, Dout)
        *, num_heads, batch_block, n_tokens):
    f32 = jnp.float32
    cdt = pq_ref.dtype            # MXU operand dtype (bf16 model -> single-pass bf16 matmuls)
    Bt, N = batch_block, n_tokens
    BtN = Bt * N

    # Flatten batch block into the matmul M dimension (M = Bt*N).
    pq = pq_ref[...].reshape(BtN, pq_ref.shape[-1])
    pk = pk_ref[...].reshape(BtN, pk_ref.shape[-1])
    pv = pv_ref[...].reshape(BtN, pv_ref.shape[-1])

    wc = wc_ref[...].astype(cdt)
    bc = bc_ref[...].astype(f32)
    g = g_ref[...].astype(f32)
    bg = bg_ref[...].astype(f32)
    wl = wl_ref[...].astype(cdt)
    bl = bl_ref[...].astype(f32)
    wo = wo_ref[...].astype(cdt)
    bo = bo_ref[...].astype(f32)

    # ---- fused projections: conv-as-matmul + LayerNorm + Linear (f32 accumulation) ----
    # x = x_proj(v)
    x = jnp.dot(pv, wc[0], preferred_element_type=f32) + bc[0:1, :]                # (BtN, Dout)
    # v = v_proj(x) = Linear(LayerNorm(x))
    v = jnp.dot(_layer_norm_f32(x, g[0:1, :], bg[0:1, :]).astype(cdt), wl[0],
                preferred_element_type=f32) + bl[0:1, :]                            # (BtN, Di)
    # q = q_proj(q) + v
    qc = jnp.dot(pq, wc[1], preferred_element_type=f32) + bc[1:2, :]
    q = jnp.dot(_layer_norm_f32(qc, g[1:2, :], bg[1:2, :]).astype(cdt), wl[1],
                preferred_element_type=f32) + bl[1:2, :] + v
    # k = k_proj(k) + v
    kc = jnp.dot(pk, wc[2], preferred_element_type=f32) + bc[2:3, :]
    k = jnp.dot(_layer_norm_f32(kc, g[2:3, :], bg[2:3, :]).astype(cdt), wl[2],
                preferred_element_type=f32) + bl[2:3, :] + v

    Di = v.shape[-1]
    dh = Di // num_heads
    scale = 1.0 / math.sqrt(dh)

    # ---- multi-head attention: heads stay packed on the Di-wide lane axis; static
    # lane slices in an unrolled Python loop (no head grid axis, no transpose). ----
    rows = []
    for b in range(Bt):
        r0 = b * N
        head_outs = []
        for h in range(num_heads):
            c0 = h * dh
            qh = (q[r0:r0 + N, c0:c0 + dh] * scale).astype(cdt)
            kh = k[r0:r0 + N, c0:c0 + dh].astype(cdt)
            vh = v[r0:r0 + N, c0:c0 + dh].astype(cdt)
            # scores (N, N), contraction over dh (no transpose), f32 accumulation
            s = jax.lax.dot_general(qh, kh, (((1,), (1,)), ((), ())),
                                    preferred_element_type=f32)
            m = jnp.max(s, axis=-1, keepdims=True)
            e = jnp.exp(s - m)
            p = e * pl.reciprocal(jnp.sum(e, axis=-1, keepdims=True), approx=True)  # EUP vrcp
            head_outs.append(jnp.dot(p.astype(cdt), vh, preferred_element_type=f32))
        rows.append(jnp.concatenate(head_outs, axis=-1))                             # (N, Di)
    attn = rows[0] if Bt == 1 else jnp.concatenate(rows, axis=0)                     # (BtN, Di)

    # ---- single out_proj matmul (K=Di) + bias + residual x; one store ----
    out = jnp.dot(attn.astype(cdt), wo, preferred_element_type=f32) + bo + x         # (BtN, Dout)
    o_ref[...] = out.reshape(Bt, N, out.shape[-1]).astype(o_ref.dtype)


# ---------------------------------------------------------------------------
# Wrapper
# ---------------------------------------------------------------------------
def _patchify(x, ksize):
    """(B, H, W, C) -> (B, (H//k)*(W//k), k*k*C): im2col for a kxk stride-k conv."""
    b, hh, ww, c = x.shape
    ho, wo = hh // ksize, ww // ksize
    x = x.reshape(b, ho, ksize, wo, ksize, c)
    x = x.transpose(0, 1, 3, 2, 4, 5)
    return x.reshape(b, ho * wo, ksize * ksize * c)


def attention_sampler(q_in, k_in, v_in, params, *, num_heads, ksize=2, batch_block=None):
    wc, bc, ln_g, ln_b, wl, bl, wo, bo = (
        params[n] for n in ("wc", "bc", "ln_g", "ln_b", "wl", "bl", "wo", "bo"))

    B, Hin, Win, _ = v_in.shape
    h_out, w_out = Hin // ksize, Win // ksize
    N = h_out * w_out
    P = wc.shape[1]
    Dout = wc.shape[2]
    Di = wl.shape[2]
    dh = Di // num_heads
    dtype = v_in.dtype

    if batch_block is None:
        # One batch element per program when B is small keeps both v7x TensorCores
        # busy ("parallel" batch axis); pack 2 per program (matmul M = 2*N) once
        # there are enough grid steps to go around.
        batch_block = 2 if (B % 2 == 0 and B >= 4) else 1
    assert B % batch_block == 0, (B, batch_block)
    n_progs = B // batch_block

    pq = _patchify(q_in, ksize)
    pk = _patchify(k_in, ksize)
    pv = _patchify(v_in, ksize)

    cost = pl.CostEstimate(
        flops=int(2 * B * N * (3 * (P * Dout + Dout * Di) + Di * Dout)
                  + 4 * B * num_heads * N * N * dh),
        transcendentals=int(B * num_heads * N * (N + 1) + 3 * B * N),
        bytes_accessed=int(4 * (3 * B * N * P + B * N * Dout
                                + 3 * (P * Dout + Dout * Di) + Di * Dout
                                + 9 * Dout + 3 * Di)),
    )

    kernel = functools.partial(
        fused_attention_sampler_kernel,
        num_heads=num_heads, batch_block=batch_block, n_tokens=N)

    out = pl.pallas_call(
        kernel,
        out_shape=jax.ShapeDtypeStruct((B, N, Dout), dtype),
        grid=(n_progs,),
        in_specs=[
            pl.BlockSpec((batch_block, N, P), lambda i: (i, 0, 0)),
            pl.BlockSpec((batch_block, N, P), lambda i: (i, 0, 0)),
            pl.BlockSpec((batch_block, N, P), lambda i: (i, 0, 0)),
            pl.BlockSpec((3, P, Dout), lambda i: (0, 0, 0)),
            pl.BlockSpec((3, Dout), lambda i: (0, 0)),
            pl.BlockSpec((3, Dout), lambda i: (0, 0)),
            pl.BlockSpec((3, Dout), lambda i: (0, 0)),
            pl.BlockSpec((3, Dout, Di), lambda i: (0, 0, 0)),
            pl.BlockSpec((3, Di), lambda i: (0, 0)),
            pl.BlockSpec((Di, Dout), lambda i: (0, 0)),
            pl.BlockSpec((1, Dout), lambda i: (0, 0)),
        ],
        out_specs=pl.BlockSpec((batch_block, N, Dout), lambda i: (i, 0, 0)),
        compiler_params=pltpu.CompilerParams(
            dimension_semantics=("parallel",),
        ),
        cost_estimate=cost,
    )(pq, pk, pv, wc, bc, ln_g, ln_b, wl, bl, wo, bo)

    return out.reshape(B, h_out, w_out, Dout)


# ---------------------------------------------------------------------------
# Pure-JAX reference mirroring the PyTorch forward (high-precision matmuls).
# ---------------------------------------------------------------------------
def attention_sampler_ref(q_in, k_in, v_in, params, *, num_heads, ksize=2):
    wc, bc, ln_g, ln_b, wl, bl, wo, bo = (
        params[n] for n in ("wc", "bc", "ln_g", "ln_b", "wl", "bl", "wo", "bo"))
    hi = jax.lax.Precision.HIGHEST

    def ln(z, g, b, eps=1e-5):
        mu = jnp.mean(z, axis=-1, keepdims=True)
        var = jnp.mean((z - mu) ** 2, axis=-1, keepdims=True)
        return (z - mu) / jnp.sqrt(var + eps) * g + b

    B, Hin, Win, _ = v_in.shape
    h_out, w_out = Hin // ksize, Win // ksize

    pq = _patchify(q_in, ksize).astype(jnp.float32)
    pk = _patchify(k_in, ksize).astype(jnp.float32)
    pv = _patchify(v_in, ksize).astype(jnp.float32)

    x = jnp.dot(pv, wc[0], precision=hi) + bc[0]
    v = jnp.dot(ln(x, ln_g[0], ln_b[0]), wl[0], precision=hi) + bl[0]
    q = jnp.dot(ln(jnp.dot(pq, wc[1], precision=hi) + bc[1], ln_g[1], ln_b[1]),
                wl[1], precision=hi) + bl[1] + v
    k = jnp.dot(ln(jnp.dot(pk, wc[2], precision=hi) + bc[2], ln_g[2], ln_b[2]),
                wl[2], precision=hi) + bl[2] + v

    N, Di = q.shape[1], q.shape[2]
    dh = Di // num_heads

    def sep(z):
        return z.reshape(B, N, num_heads, dh).transpose(0, 2, 1, 3)

    qh, kh, vh = sep(q), sep(k), sep(v)
    attn = jnp.einsum("bhnd,bhmd->bhnm", qh, kh, precision=hi) / math.sqrt(dh)
    attn = jax.nn.softmax(attn, axis=-1)
    out = jnp.einsum("bhnm,bhmd->bhnd", attn, vh, precision=hi)
    out = out.transpose(0, 2, 1, 3).reshape(B, N, Di)
    out = jnp.dot(out, wo, precision=hi) + bo
    out = out + x
    return out.reshape(B, h_out, w_out, x.shape[-1])


if __name__ == "__main__":
    B = 2
    H_IN = W_IN = 16
    IN_DIM = 8
    OUT_DIM = 32
    NUM_HEADS = 4
    DIM_HEADS = 8                    # internal_dim = 32
    KSIZE = 2                        # out_scale = 0.5 -> 2x2 stride-2 ConvSampler
    INTERNAL = NUM_HEADS * DIM_HEADS
    P = KSIZE * KSIZE * IN_DIM

    key = jax.random.PRNGKey(0)
    keys = jax.random.split(key, 11)

    q_in = jax.random.normal(keys[0], (B, H_IN, W_IN, IN_DIM), jnp.float32)
    k_in = jax.random.normal(keys[1], (B, H_IN, W_IN, IN_DIM), jnp.float32)
    v_in = jax.random.normal(keys[2], (B, H_IN, W_IN, IN_DIM), jnp.float32)

    def uniform(k, shape, fan_in):
        b = 1.0 / math.sqrt(fan_in)
        return jax.random.uniform(k, shape, jnp.float32, -b, b)

    params = {
        # 2x2 stride-2 conv weights stored in im2col (P, Dout) layout:
        #   idx 0 -> x_proj conv, idx 1 -> q_proj conv, idx 2 -> k_proj conv
        "wc": uniform(keys[3], (3, P, OUT_DIM), P),
        "bc": uniform(keys[4], (3, OUT_DIM), P),
        # LayerNorms: idx 0 -> v_proj LN, idx 1 -> q_proj LN, idx 2 -> k_proj LN
        "ln_g": jnp.ones((3, OUT_DIM), jnp.float32)
                + 0.1 * jax.random.normal(keys[5], (3, OUT_DIM), jnp.float32),
        "ln_b": 0.1 * jax.random.normal(keys[6], (3, OUT_DIM), jnp.float32),
        # Linear(out_dim, internal_dim): idx 0 -> v_proj, idx 1 -> q_proj, idx 2 -> k_proj
        "wl": uniform(keys[7], (3, OUT_DIM, INTERNAL), OUT_DIM),
        "bl": uniform(keys[8], (3, INTERNAL), OUT_DIM),
        # out_proj Linear(internal_dim, out_dim), stored transposed (Di, Dout)
        "wo": uniform(keys[9], (INTERNAL, OUT_DIM), INTERNAL),
        "bo": uniform(keys[10], (1, OUT_DIM), INTERNAL),
    }

    ref = attention_sampler_ref(q_in, k_in, v_in, params, num_heads=NUM_HEADS, ksize=KSIZE)
    h_out, w_out = H_IN // KSIZE, W_IN // KSIZE

    # Default path: one batch element per program (batch axis "parallel").
    out1 = jax.block_until_ready(
        attention_sampler(q_in, k_in, v_in, params, num_heads=NUM_HEADS, ksize=KSIZE))
    assert out1.shape == (B, h_out, w_out, OUT_DIM), out1.shape
    err1 = float(jnp.max(jnp.abs(out1 - ref)))
    # Tolerance accommodates pl.reciprocal(approx=True) in the softmax normalization.
    assert jnp.allclose(out1, ref, atol=5e-3, rtol=5e-3), \
        f"mismatch vs reference (batch_block=1), max_err={err1}"

    # Packed path: 2 batch elements per program (matmul M = 2*N = 128).
    out2 = jax.block_until_ready(
        attention_sampler(q_in, k_in, v_in, params, num_heads=NUM_HEADS, ksize=KSIZE,
                          batch_block=2))
    err2 = float(jnp.max(jnp.abs(out2 - ref)))
    assert jnp.allclose(out2, ref, atol=5e-3, rtol=5e-3), \
        f"mismatch vs reference (batch_block=2), max_err={err2}"

    print("KERNEL_OK")
</pallas_src>

<mosaic_0001>
module attributes {stable_mosaic.version = 11 : i64} {
  func.func @fused_attention_sampler_kernel(%arg0: i32, %arg1: memref<1x64x32xf32, #tpu.memory_space<vmem>>, %arg2: memref<1x64x32xf32, #tpu.memory_space<vmem>>, %arg3: memref<1x64x32xf32, #tpu.memory_space<vmem>>, %arg4: memref<3x32x32xf32, #tpu.memory_space<vmem>>, %arg5: memref<3x32xf32, #tpu.memory_space<vmem>>, %arg6: memref<3x32xf32, #tpu.memory_space<vmem>>, %arg7: memref<3x32xf32, #tpu.memory_space<vmem>>, %arg8: memref<3x32x32xf32, #tpu.memory_space<vmem>>, %arg9: memref<3x32xf32, #tpu.memory_space<vmem>>, %arg10: memref<32x32xf32, #tpu.memory_space<vmem>>, %arg11: memref<1x32xf32, #tpu.memory_space<vmem>>, %arg12: memref<1x64x32xf32, #tpu.memory_space<vmem>>) attributes {dimension_semantics = [#tpu.dimension_semantics<parallel>], iteration_bounds = array<i64: 2>, scalar_prefetch = 0 : i64, scratch_operands = 0 : i64, tpu.core_type = #tpu.core_type<tc>, window_params = [{transform_indices = @transform_0, window_bounds = array<i64: 1, 64, 32>}, {transform_indices = @transform_1, window_bounds = array<i64: 1, 64, 32>}, {transform_indices = @transform_2, window_bounds = array<i64: 1, 64, 32>}, {pipeline_mode = #tpu.pipeline_mode<synchronous>, transform_indices = @transform_3, window_bounds = array<i64: 3, 32, 32>}, {pipeline_mode = #tpu.pipeline_mode<synchronous>, transform_indices = @transform_4, window_bounds = array<i64: 3, 32>}, {pipeline_mode = #tpu.pipeline_mode<synchronous>, transform_indices = @transform_5, window_bounds = array<i64: 3, 32>}, {pipeline_mode = #tpu.pipeline_mode<synchronous>, transform_indices = @transform_6, window_bounds = array<i64: 3, 32>}, {pipeline_mode = #tpu.pipeline_mode<synchronous>, transform_indices = @transform_7, window_bounds = array<i64: 3, 32, 32>}, {pipeline_mode = #tpu.pipeline_mode<synchronous>, transform_indices = @transform_8, window_bounds = array<i64: 3, 32>}, {pipeline_mode = #tpu.pipeline_mode<synchronous>, transform_indices = @transform_9, window_bounds = array<i64: 32, 32>}, {pipeline_mode = #tpu.pipeline_mode<synchronous>, transform_indices = @transform_10, window_bounds = array<i64: 1, 32>}, {transform_indices = @transform_11, window_bounds = array<i64: 1, 64, 32>}]} {
    %c0 = arith.constant 0 : index
    %c0_0 = arith.constant 0 : index
    %c0_1 = arith.constant 0 : index
    %0 = vector.load %arg1[%c0, %c0_0, %c0_1] : memref<1x64x32xf32, #tpu.memory_space<vmem>>, vector<1x64x32xf32>
    %1 = vector.shape_cast %0 : vector<1x64x32xf32> to vector<64x32xf32>
    %c0_2 = arith.constant 0 : index
    %c0_3 = arith.constant 0 : index
    %c0_4 = arith.constant 0 : index
    %2 = vector.load %arg2[%c0_2, %c0_3, %c0_4] : memref<1x64x32xf32, #tpu.memory_space<vmem>>, vector<1x64x32xf32>
    %3 = vector.shape_cast %2 : vector<1x64x32xf32> to vector<64x32xf32>
    %c0_5 = arith.constant 0 : index
    %c0_6 = arith.constant 0 : index
    %c0_7 = arith.constant 0 : index
    %4 = vector.load %arg3[%c0_5, %c0_6, %c0_7] : memref<1x64x32xf32, #tpu.memory_space<vmem>>, vector<1x64x32xf32>
    %5 = vector.shape_cast %4 : vector<1x64x32xf32> to vector<64x32xf32>
    %c0_8 = arith.constant 0 : index
    %c0_9 = arith.constant 0 : index
    %c0_10 = arith.constant 0 : index
    %6 = vector.load %arg4[%c0_8, %c0_9, %c0_10] : memref<3x32x32xf32, #tpu.memory_space<vmem>>, vector<3x32x32xf32>
    %c0_11 = arith.constant 0 : index
    %c0_12 = arith.constant 0 : index
    %7 = vector.load %arg5[%c0_11, %c0_12] : memref<3x32xf32, #tpu.memory_space<vmem>>, vector<3x32xf32>
    %c0_13 = arith.constant 0 : index
    %c0_14 = arith.constant 0 : index
    %8 = vector.load %arg6[%c0_13, %c0_14] : memref<3x32xf32, #tpu.memory_space<vmem>>, vector<3x32xf32>
    %c0_15 = arith.constant 0 : index
    %c0_16 = arith.constant 0 : index
    %9 = vector.load %arg7[%c0_15, %c0_16] : memref<3x32xf32, #tpu.memory_space<vmem>>, vector<3x32xf32>
    %c0_17 = arith.constant 0 : index
    %c0_18 = arith.constant 0 : index
    %c0_19 = arith.constant 0 : index
    %10 = vector.load %arg8[%c0_17, %c0_18, %c0_19] : memref<3x32x32xf32, #tpu.memory_space<vmem>>, vector<3x32x32xf32>
    %c0_20 = arith.constant 0 : index
    %c0_21 = arith.constant 0 : index
    %11 = vector.load %arg9[%c0_20, %c0_21] : memref<3x32xf32, #tpu.memory_space<vmem>>, vector<3x32xf32>
    %c0_22 = arith.constant 0 : index
    %c0_23 = arith.constant 0 : index
    %12 = vector.load %arg10[%c0_22, %c0_23] : memref<32x32xf32, #tpu.memory_space<vmem>>, vector<32x32xf32>
    %c0_24 = arith.constant 0 : index
    %c0_25 = arith.constant 0 : index
    %13 = vector.load %arg11[%c0_24, %c0_25] : memref<1x32xf32, #tpu.memory_space<vmem>>, vector<1x32xf32>
    %14 = vector.extract_strided_slice %6 {offsets = [0, 0, 0], sizes = [1, 32, 32], strides = [1, 1, 1]} : vector<3x32x32xf32> to vector<1x32x32xf32>
    %15 = vector.shape_cast %14 : vector<1x32x32xf32> to vector<32x32xf32>
    %cst = arith.constant dense<0.000000e+00> : vector<64x32xf32>
    %16 = tpu.matmul %5, %15, %cst {dimension_numbers = #tpu.dot_dimension_numbers<[1], [0], [0], [1], [0, 0, 1, 1], [], []>} : vector<64x32xf32>, vector<32x32xf32>, vector<64x32xf32> -> vector<64x32xf32>
    %17 = vector.extract_strided_slice %7 {offsets = [0, 0], sizes = [1, 32], strides = [1, 1]} : vector<3x32xf32> to vector<1x32xf32>
    %18 = vector.broadcast %17 : vector<1x32xf32> to vector<64x32xf32>
    %19 = arith.addf %16, %18 : vector<64x32xf32>
    %20 = vector.extract_strided_slice %8 {offsets = [0, 0], sizes = [1, 32], strides = [1, 1]} : vector<3x32xf32> to vector<1x32xf32>
    %21 = vector.extract_strided_slice %9 {offsets = [0, 0], sizes = [1, 32], strides = [1, 1]} : vector<3x32xf32> to vector<1x32xf32>
    %cst_26 = arith.constant dense<0.000000e+00> : vector<64xf32>
    %22 = vector.multi_reduction <add>, %19, %cst_26 [1] : vector<64x32xf32> to vector<64xf32>
    %23 = vector.shape_cast %22 : vector<64xf32> to vector<64x1xf32>
    %cst_27 = arith.constant 3.200000e+01 : f32
    %24 = vector.broadcast %cst_27 : f32 to vector<64x1xf32>
    %25 = arith.divf %23, %24 : vector<64x1xf32>
    %26 = vector.broadcast %25 : vector<64x1xf32> to vector<64x32xf32>
    %27 = arith.subf %19, %26 : vector<64x32xf32>
    %28 = arith.mulf %27, %27 : vector<64x32xf32>
    %cst_28 = arith.constant dense<0.000000e+00> : vector<64xf32>
    %29 = vector.multi_reduction <add>, %28, %cst_28 [1] : vector<64x32xf32> to vector<64xf32>
    %30 = vector.shape_cast %29 : vector<64xf32> to vector<64x1xf32>
    %cst_29 = arith.constant 3.200000e+01 : f32
    %31 = vector.broadcast %cst_29 : f32 to vector<64x1xf32>
    %32 = arith.divf %30, %31 : vector<64x1xf32>
    %cst_30 = arith.constant 9.99999974E-6 : f32
    %33 = vector.broadcast %cst_30 : f32 to vector<64x1xf32>
    %34 = arith.addf %32, %33 : vector<64x1xf32>
    %35 = math.rsqrt %34 : vector<64x1xf32>
    %36 = vector.broadcast %35 : vector<64x1xf32> to vector<64x32xf32>
    %37 = arith.mulf %27, %36 : vector<64x32xf32>
    %38 = vector.broadcast %20 : vector<1x32xf32> to vector<64x32xf32>
    %39 = arith.mulf %37, %38 : vector<64x32xf32>
    %40 = vector.broadcast %21 : vector<1x32xf32> to vector<64x32xf32>
    %41 = arith.addf %39, %40 : vector<64x32xf32>
    %42 = vector.extract_strided_slice %10 {offsets = [0, 0, 0], sizes = [1, 32, 32], strides = [1, 1, 1]} : vector<3x32x32xf32> to vector<1x32x32xf32>
    %43 = vector.shape_cast %42 : vector<1x32x32xf32> to vector<32x32xf32>
    %cst_31 = arith.constant dense<0.000000e+00> : vector<64x32xf32>
    %44 = tpu.matmul %41, %43, %cst_31 {dimension_numbers = #tpu.dot_dimension_numbers<[1], [0], [0], [1], [0, 0, 1, 1], [], []>} : vector<64x32xf32>, vector<32x32xf32>, vector<64x32xf32> -> vector<64x32xf32>
    %45 = vector.extract_strided_slice %11 {offsets = [0, 0], sizes = [1, 32], strides = [1, 1]} : vector<3x32xf32> to vector<1x32xf32>
    %46 = vector.broadcast %45 : vector<1x32xf32> to vector<64x32xf32>
    %47 = arith.addf %44, %46 : vector<64x32xf32>
    %48 = vector.extract_strided_slice %6 {offsets = [1, 0, 0], sizes = [1, 32, 32], strides = [1, 1, 1]} : vector<3x32x32xf32> to vector<1x32x32xf32>
    %49 = vector.shape_cast %48 : vector<1x32x32xf32> to vector<32x32xf32>
    %cst_32 = arith.constant dense<0.000000e+00> : vector<64x32xf32>
    %50 = tpu.matmul %1, %49, %cst_32 {dimension_numbers = #tpu.dot_dimension_numbers<[1], [0], [0], [1], [0, 0, 1, 1], [], []>} : vector<64x32xf32>, vector<32x32xf32>, vector<64x32xf32> -> vector<64x32xf32>
    %51 = vector.extract_strided_slice %7 {offsets = [1, 0], sizes = [1, 32], strides = [1, 1]} : vector<3x32xf32> to vector<1x32xf32>
    %52 = vector.broadcast %51 : vector<1x32xf32> to vector<64x32xf32>
    %53 = arith.addf %50, %52 : vector<64x32xf32>
    %54 = vector.extract_strided_slice %8 {offsets = [1, 0], sizes = [1, 32], strides = [1, 1]} : vector<3x32xf32> to vector<1x32xf32>
    %55 = vector.extract_strided_slice %9 {offsets = [1, 0], sizes = [1, 32], strides = [1, 1]} : vector<3x32xf32> to vector<1x32xf32>
    %cst_33 = arith.constant dense<0.000000e+00> : vector<64xf32>
    %56 = vector.multi_reduction <add>, %53, %cst_33 [1] : vector<64x32xf32> to vector<64xf32>
    %57 = vector.shape_cast %56 : vector<64xf32> to vector<64x1xf32>
    %cst_34 = arith.constant 3.200000e+01 : f32
    %58 = vector.broadcast %cst_34 : f32 to vector<64x1xf32>
    %59 = arith.divf %57, %58 : vector<64x1xf32>
    %60 = vector.broadcast %59 : vector<64x1xf32> to vector<64x32xf32>
    %61 = arith.subf %53, %60 : vector<64x32xf32>
    %62 = arith.mulf %61, %61 : vector<64x32xf32>
    %cst_35 = arith.constant dense<0.000000e+00> : vector<64xf32>
    %63 = vector.multi_reduction <add>, %62, %cst_35 [1] : vector<64x32xf32> to vector<64xf32>
    %64 = vector.shape_cast %63 : vector<64xf32> to vector<64x1xf32>
    %cst_36 = arith.constant 3.200000e+01 : f32
    %65 = vector.broadcast %cst_36 : f32 to vector<64x1xf32>
    %66 = arith.divf %64, %65 : vector<64x1xf32>
    %cst_37 = arith.constant 9.99999974E-6 : f32
    %67 = vector.broadcast %cst_37 : f32 to vector<64x1xf32>
    %68 = arith.addf %66, %67 : vector<64x1xf32>
    %69 = math.rsqrt %68 : vector<64x1xf32>
    %70 = vector.broadcast %69 : vector<64x1xf32> to vector<64x32xf32>
    %71 = arith.mulf %61, %70 : vector<64x32xf32>
    %72 = vector.broadcast %54 : vector<1x32xf32> to vector<64x32xf32>
    %73 = arith.mulf %71, %72 : vector<64x32xf32>
    %74 = vector.broadcast %55 : vector<1x32xf32> to vector<64x32xf32>
    %75 = arith.addf %73, %74 : vector<64x32xf32>
    %76 = vector.extract_strided_slice %10 {offsets = [1, 0, 0], sizes = [1, 32, 32], strides = [1, 1, 1]} : vector<3x32x32xf32> to vector<1x32x32xf32>
    %77 = vector.shape_cast %76 : vector<1x32x32xf32> to vector<32x32xf32>
    %cst_38 = arith.constant dense<0.000000e+00> : vector<64x32xf32>
    %78 = tpu.matmul %75, %77, %cst_38 {dimension_numbers = #tpu.dot_dimension_numbers<[1], [0], [0], [1], [0, 0, 1, 1], [], []>} : vector<64x32xf32>, vector<32x32xf32>, vector<64x32xf32> -> vector<64x32xf32>
    %79 = vector.extract_strided_slice %11 {offsets = [1, 0], sizes = [1, 32], strides = [1, 1]} : vector<3x32xf32> to vector<1x32xf32>
    %80 = vector.broadcast %79 : vector<1x32xf32> to vector<64x32xf32>
    %81 = arith.addf %78, %80 : vector<64x32xf32>
    %82 = arith.addf %81, %47 : vector<64x32xf32>
    %83 = vector.extract_strided_slice %6 {offsets = [2, 0, 0], sizes = [1, 32, 32], strides = [1, 1, 1]} : vector<3x32x32xf32> to vector<1x32x32xf32>
    %84 = vector.shape_cast %83 : vector<1x32x32xf32> to vector<32x32xf32>
    %cst_39 = arith.constant dense<0.000000e+00> : vector<64x32xf32>
    %85 = tpu.matmul %3, %84, %cst_39 {dimension_numbers = #tpu.dot_dimension_numbers<[1], [0], [0], [1], [0, 0, 1, 1], [], []>} : vector<64x32xf32>, vector<32x32xf32>, vector<64x32xf32> -> vector<64x32xf32>
    %86 = vector.extract_strided_slice %7 {offsets = [2, 0], sizes = [1, 32], strides = [1, 1]} : vector<3x32xf32> to vector<1x32xf32>
    %87 = vector.broadcast %86 : vector<1x32xf32> to vector<64x32xf32>
    %88 = arith.addf %85, %87 : vector<64x32xf32>
    %89 = vector.extract_strided_slice %8 {offsets = [2, 0], sizes = [1, 32], strides = [1, 1]} : vector<3x32xf32> to vector<1x32xf32>
    %90 = vector.extract_strided_slice %9 {offsets = [2, 0], sizes = [1, 32], strides = [1, 1]} : vector<3x32xf32> to vector<1x32xf32>
    %cst_40 = arith.constant dense<0.000000e+00> : vector<64xf32>
    %91 = vector.multi_reduction <add>, %88, %cst_40 [1] : vector<64x32xf32> to vector<64xf32>
    %92 = vector.shape_cast %91 : vector<64xf32> to vector<64x1xf32>
    %cst_41 = arith.constant 3.200000e+01 : f32
    %93 = vector.broadcast %cst_41 : f32 to vector<64x1xf32>
    %94 = arith.divf %92, %93 : vector<64x1xf32>
    %95 = vector.broadcast %94 : vector<64x1xf32> to vector<64x32xf32>
    %96 = arith.subf %88, %95 : vector<64x32xf32>
    %97 = arith.mulf %96, %96 : vector<64x32xf32>
    %cst_42 = arith.constant dense<0.000000e+00> : vector<64xf32>
    %98 = vector.multi_reduction <add>, %97, %cst_42 [1] : vector<64x32xf32> to vector<64xf32>
    %99 = vector.shape_cast %98 : vector<64xf32> to vector<64x1xf32>
    %cst_43 = arith.constant 3.200000e+01 : f32
    %100 = vector.broadcast %cst_43 : f32 to vector<64x1xf32>
    %101 = arith.divf %99, %100 : vector<64x1xf32>
    %cst_44 = arith.constant 9.99999974E-6 : f32
    %102 = vector.broadcast %cst_44 : f32 to vector<64x1xf32>
    %103 = arith.addf %101, %102 : vector<64x1xf32>
    %104 = math.rsqrt %103 : vector<64x1xf32>
    %105 = vector.broadcast %104 : vector<64x1xf32> to vector<64x32xf32>
    %106 = arith.mulf %96, %105 : vector<64x32xf32>
    %107 = vector.broadcast %89 : vector<1x32xf32> to vector<64x32xf32>
    %108 = arith.mulf %106, %107 : vector<64x32xf32>
    %109 = vector.broadcast %90 : vector<1x32xf32> to vector<64x32xf32>
    %110 = arith.addf %108, %109 : vector<64x32xf32>
    %111 = vector.extract_strided_slice %10 {offsets = [2, 0, 0], sizes = [1, 32, 32], strides = [1, 1, 1]} : vector<3x32x32xf32> to vector<1x32x32xf32>
    %112 = vector.shape_cast %111 : vector<1x32x32xf32> to vector<32x32xf32>
    %cst_45 = arith.constant dense<0.000000e+00> : vector<64x32xf32>
    %113 = tpu.matmul %110, %112, %cst_45 {dimension_numbers = #tpu.dot_dimension_numbers<[1], [0], [0], [1], [0, 0, 1, 1], [], []>} : vector<64x32xf32>, vector<32x32xf32>, vector<64x32xf32> -> vector<64x32xf32>
    %114 = vector.extract_strided_slice %11 {offsets = [2, 0], sizes = [1, 32], strides = [1, 1]} : vector<3x32xf32> to vector<1x32xf32>
    %115 = vector.broadcast %114 : vector<1x32xf32> to vector<64x32xf32>
    %116 = arith.addf %113, %115 : vector<64x32xf32>
    %117 = arith.addf %116, %47 : vector<64x32xf32>
    %118 = vector.extract_strided_slice %82 {offsets = [0, 0], sizes = [64, 8], strides = [1, 1]} : vector<64x32xf32> to vector<64x8xf32>
    %cst_46 = arith.constant 0.353553385 : f32
    %119 = vector.broadcast %cst_46 : f32 to vector<64x8xf32>
    %120 = arith.mulf %118, %119 : vector<64x8xf32>
    %121 = vector.extract_strided_slice %117 {offsets = [0, 0], sizes = [64, 8], strides = [1, 1]} : vector<64x32xf32> to vector<64x8xf32>
    %122 = vector.extract_strided_slice %47 {offsets = [0, 0], sizes = [64, 8], strides = [1, 1]} : vector<64x32xf32> to vector<64x8xf32>
    %cst_47 = arith.constant dense<0.000000e+00> : vector<64x64xf32>
    %123 = tpu.matmul %120, %121, %cst_47 {dimension_numbers = #tpu.dot_dimension_numbers<[1], [1], [0], [0], [0, 0, 1, 0], [], []>} : vector<64x8xf32>, vector<64x8xf32>, vector<64x64xf32> -> vector<64x64xf32>
    %cst_48 = arith.constant dense<0xFF800000> : vector<64xf32>
    %124 = vector.multi_reduction <maximumf>, %123, %cst_48 [1] : vector<64x64xf32> to vector<64xf32>
    %125 = vector.shape_cast %124 : vector<64xf32> to vector<64x1xf32>
    %126 = vector.broadcast %125 : vector<64x1xf32> to vector<64x64xf32>
    %127 = arith.subf %123, %126 : vector<64x64xf32>
    %128 = math.exp %127 : vector<64x64xf32>
    %cst_49 = arith.constant dense<0.000000e+00> : vector<64xf32>
    %129 = vector.multi_reduction <add>, %128, %cst_49 [1] : vector<64x64xf32> to vector<64xf32>
    %130 = vector.shape_cast %129 : vector<64xf32> to vector<64x1xf32>
    %131 = tpu.reciprocal %130 {approx = true} : vector<64x1xf32> -> vector<64x1xf32>
    %132 = vector.broadcast %131 : vector<64x1xf32> to vector<64x64xf32>
    %133 = arith.mulf %128, %132 : vector<64x64xf32>
    %cst_50 = arith.constant dense<0.000000e+00> : vector<64x8xf32>
    %134 = tpu.matmul %133, %122, %cst_50 {dimension_numbers = #tpu.dot_dimension_numbers<[1], [0], [0], [1], [0, 0, 1, 1], [], []>} : vector<64x64xf32>, vector<64x8xf32>, vector<64x8xf32> -> vector<64x8xf32>
    %135 = vector.extract_strided_slice %82 {offsets = [0, 8], sizes = [64, 8], strides = [1, 1]} : vector<64x32xf32> to vector<64x8xf32>
    %cst_51 = arith.constant 0.353553385 : f32
    %136 = vector.broadcast %cst_51 : f32 to vector<64x8xf32>
    %137 = arith.mulf %135, %136 : vector<64x8xf32>
    %138 = vector.extract_strided_slice %117 {offsets = [0, 8], sizes = [64, 8], strides = [1, 1]} : vector<64x32xf32> to vector<64x8xf32>
    %139 = vector.extract_strided_slice %47 {offsets = [0, 8], sizes = [64, 8], strides = [1, 1]} : vector<64x32xf32> to vector<64x8xf32>
    %cst_52 = arith.constant dense<0.000000e+00> : vector<64x64xf32>
    %140 = tpu.matmul %137, %138, %cst_52 {dimension_numbers = #tpu.dot_dimension_numbers<[1], [1], [0], [0], [0, 0, 1, 0], [], []>} : vector<64x8xf32>, vector<64x8xf32>, vector<64x64xf32> -> vector<64x64xf32>
    %cst_53 = arith.constant dense<0xFF800000> : vector<64xf32>
    %141 = vector.multi_reduction <maximumf>, %140, %cst_53 [1] : vector<64x64xf32> to vector<64xf32>
    %142 = vector.shape_cast %141 : vector<64xf32> to vector<64x1xf32>
    %143 = vector.broadcast %142 : vector<64x1xf32> to vector<64x64xf32>
    %144 = arith.subf %140, %143 : vector<64x64xf32>
    %145 = math.exp %144 : vector<64x64xf32>
    %cst_54 = arith.constant dense<0.000000e+00> : vector<64xf32>
    %146 = vector.multi_reduction <add>, %145, %cst_54 [1] : vector<64x64xf32> to vector<64xf32>
    %147 = vector.shape_cast %146 : vector<64xf32> to vector<64x1xf32>
    %148 = tpu.reciprocal %147 {approx = true} : vector<64x1xf32> -> vector<64x1xf32>
    %149 = vector.broadcast %148 : vector<64x1xf32> to vector<64x64xf32>
    %150 = arith.mulf %145, %149 : vector<64x64xf32>
    %cst_55 = arith.constant dense<0.000000e+00> : vector<64x8xf32>
    %151 = tpu.matmul %150, %139, %cst_55 {dimension_numbers = #tpu.dot_dimension_numbers<[1], [0], [0], [1], [0, 0, 1, 1], [], []>} : vector<64x64xf32>, vector<64x8xf32>, vector<64x8xf32> -> vector<64x8xf32>
    %152 = vector.extract_strided_slice %82 {offsets = [0, 16], sizes = [64, 8], strides = [1, 1]} : vector<64x32xf32> to vector<64x8xf32>
    %cst_56 = arith.constant 0.353553385 : f32
    %153 = vector.broadcast %cst_56 : f32 to vector<64x8xf32>
    %154 = arith.mulf %152, %153 : vector<64x8xf32>
    %155 = vector.extract_strided_slice %117 {offsets = [0, 16], sizes = [64, 8], strides = [1, 1]} : vector<64x32xf32> to vector<64x8xf32>
    %156 = vector.extract_strided_slice %47 {offsets = [0, 16], sizes = [64, 8], strides = [1, 1]} : vector<64x32xf32> to vector<64x8xf32>
    %cst_57 = arith.constant dense<0.000000e+00> : vector<64x64xf32>
    %157 = tpu.matmul %154, %155, %cst_57 {dimension_numbers = #tpu.dot_dimension_numbers<[1], [1], [0], [0], [0, 0, 1, 0], [], []>} : vector<64x8xf32>, vector<64x8xf32>, vector<64x64xf32> -> vector<64x64xf32>
    %cst_58 = arith.constant dense<0xFF800000> : vector<64xf32>
    %158 = vector.multi_reduction <maximumf>, %157, %cst_58 [1] : vector<64x64xf32> to vector<64xf32>
    %159 = vector.shape_cast %158 : vector<64xf32> to vector<64x1xf32>
    %160 = vector.broadcast %159 : vector<64x1xf32> to vector<64x64xf32>
    %161 = arith.subf %157, %160 : vector<64x64xf32>
    %162 = math.exp %161 : vector<64x64xf32>
    %cst_59 = arith.constant dense<0.000000e+00> : vector<64xf32>
    %163 = vector.multi_reduction <add>, %162, %cst_59 [1] : vector<64x64xf32> to vector<64xf32>
    %164 = vector.shape_cast %163 : vector<64xf32> to vector<64x1xf32>
    %165 = tpu.reciprocal %164 {approx = true} : vector<64x1xf32> -> vector<64x1xf32>
    %166 = vector.broadcast %165 : vector<64x1xf32> to vector<64x64xf32>
    %167 = arith.mulf %162, %166 : vector<64x64xf32>
    %cst_60 = arith.constant dense<0.000000e+00> : vector<64x8xf32>
    %168 = tpu.matmul %167, %156, %cst_60 {dimension_numbers = #tpu.dot_dimension_numbers<[1], [0], [0], [1], [0, 0, 1, 1], [], []>} : vector<64x64xf32>, vector<64x8xf32>, vector<64x8xf32> -> vector<64x8xf32>
    %169 = vector.extract_strided_slice %82 {offsets = [0, 24], sizes = [64, 8], strides = [1, 1]} : vector<64x32xf32> to vector<64x8xf32>
    %cst_61 = arith.constant 0.353553385 : f32
    %170 = vector.broadcast %cst_61 : f32 to vector<64x8xf32>
    %171 = arith.mulf %169, %170 : vector<64x8xf32>
    %172 = vector.extract_strided_slice %117 {offsets = [0, 24], sizes = [64, 8], strides = [1, 1]} : vector<64x32xf32> to vector<64x8xf32>
    %173 = vector.extract_strided_slice %47 {offsets = [0, 24], sizes = [64, 8], strides = [1, 1]} : vector<64x32xf32> to vector<64x8xf32>
    %cst_62 = arith.constant dense<0.000000e+00> : vector<64x64xf32>
    %174 = tpu.matmul %171, %172, %cst_62 {dimension_numbers = #tpu.dot_dimension_numbers<[1], [1], [0], [0], [0, 0, 1, 0], [], []>} : vector<64x8xf32>, vector<64x8xf32>, vector<64x64xf32> -> vector<64x64xf32>
    %cst_63 = arith.constant dense<0xFF800000> : vector<64xf32>
    %175 = vector.multi_reduction <maximumf>, %174, %cst_63 [1] : vector<64x64xf32> to vector<64xf32>
    %176 = vector.shape_cast %175 : vector<64xf32> to vector<64x1xf32>
    %177 = vector.broadcast %176 : vector<64x1xf32> to vector<64x64xf32>
    %178 = arith.subf %174, %177 : vector<64x64xf32>
    %179 = math.exp %178 : vector<64x64xf32>
    %cst_64 = arith.constant dense<0.000000e+00> : vector<64xf32>
    %180 = vector.multi_reduction <add>, %179, %cst_64 [1] : vector<64x64xf32> to vector<64xf32>
    %181 = vector.shape_cast %180 : vector<64xf32> to vector<64x1xf32>
    %182 = tpu.reciprocal %181 {approx = true} : vector<64x1xf32> -> vector<64x1xf32>
    %183 = vector.broadcast %182 : vector<64x1xf32> to vector<64x64xf32>
    %184 = arith.mulf %179, %183 : vector<64x64xf32>
    %cst_65 = arith.constant dense<0.000000e+00> : vector<64x8xf32>
    %185 = tpu.matmul %184, %173, %cst_65 {dimension_numbers = #tpu.dot_dimension_numbers<[1], [0], [0], [1], [0, 0, 1, 1], [], []>} : vector<64x64xf32>, vector<64x8xf32>, vector<64x8xf32> -> vector<64x8xf32>
    %186 = tpu.concatenate %134, %151, %168, %185 in 1 : vector<64x8xf32>, vector<64x8xf32>, vector<64x8xf32>, vector<64x8xf32> -> vector<64x32xf32>
    %cst_66 = arith.constant dense<0.000000e+00> : vector<64x32xf32>
    %187 = tpu.matmul %186, %12, %cst_66 {dimension_numbers = #tpu.dot_dimension_numbers<[1], [0], [0], [1], [0, 0, 1, 1], [], []>} : vector<64x32xf32>, vector<32x32xf32>, vector<64x32xf32> -> vector<64x32xf32>
    %188 = vector.broadcast %13 : vector<1x32xf32> to vector<64x32xf32>
    %189 = arith.addf %187, %188 : vector<64x32xf32>
    %190 = arith.addf %189, %19 : vector<64x32xf32>
    %191 = vector.shape_cast %190 : vector<64x32xf32> to vector<1x64x32xf32>
    %c0_67 = arith.constant 0 : index
    %c0_68 = arith.constant 0 : index
    %c0_69 = arith.constant 0 : index
    %192 = vector.load %arg12[%c0_67, %c0_68, %c0_69] : memref<1x64x32xf32, #tpu.memory_space<vmem>>, vector<1x64x32xf32>
    tpu.vector_store %arg12[%c0_67, %c0_68, %c0_69], %191 {strides = array<i32>} : memref<1x64x32xf32, #tpu.memory_space<vmem>>, vector<1x64x32xf32>,
    return
  }
  func.func @transform_0(%arg0: i32) -> (i32, i32, i32) {
    %c0_i32 = arith.constant 0 : i32
    %c0_i32_0 = arith.constant 0 : i32
    %c0_i32_1 = arith.constant 0 : i32
    return %arg0, %c0_i32, %c0_i32_0 : i32, i32, i32
  }
  func.func @transform_1(%arg0: i32) -> (i32, i32, i32) {
    %c0_i32 = arith.constant 0 : i32
    %c0_i32_0 = arith.constant 0 : i32
    %c0_i32_1 = arith.constant 0 : i32
    return %arg0, %c0_i32, %c0_i32_0 : i32, i32, i32
  }
  func.func @transform_2(%arg0: i32) -> (i32, i32, i32) {
    %c0_i32 = arith.constant 0 : i32
    %c0_i32_0 = arith.constant 0 : i32
    %c0_i32_1 = arith.constant 0 : i32
    return %arg0, %c0_i32, %c0_i32_0 : i32, i32, i32
  }
  func.func @transform_3(%arg0: i32) -> (i32, i32, i32) {
    %c0_i32 = arith.constant 0 : i32
    %c0_i32_0 = arith.constant 0 : i32
    %c0_i32_1 = arith.constant 0 : i32
    %c0_i32_2 = arith.constant 0 : i32
    return %c0_i32, %c0_i32_0, %c0_i32_1 : i32, i32, i32
  }
  func.func @transform_4(%arg0: i32) -> (i32, i32) {
    %c0_i32 = arith.constant 0 : i32
    %c0_i32_0 = arith.constant 0 : i32
    %c0_i32_1 = arith.constant 0 : i32
    return %c0_i32, %c0_i32_0 : i32, i32
  }
  func.func @transform_5(%arg0: i32) -> (i32, i32) {
    %c0_i32 = arith.constant 0 : i32
    %c0_i32_0 = arith.constant 0 : i32
    %c0_i32_1 = arith.constant 0 : i32
    return %c0_i32, %c0_i32_0 : i32, i32
  }
  func.func @transform_6(%arg0: i32) -> (i32, i32) {
    %c0_i32 = arith.constant 0 : i32
    %c0_i32_0 = arith.constant 0 : i32
    %c0_i32_1 = arith.constant 0 : i32
    return %c0_i32, %c0_i32_0 : i32, i32
  }
  func.func @transform_7(%arg0: i32) -> (i32, i32, i32) {
    %c0_i32 = arith.constant 0 : i32
    %c0_i32_0 = arith.constant 0 : i32
    %c0_i32_1 = arith.constant 0 : i32
    %c0_i32_2 = arith.constant 0 : i32
    return %c0_i32, %c0_i32_0, %c0_i32_1 : i32, i32, i32
  }
  func.func @transform_8(%arg0: i32) -> (i32, i32) {
    %c0_i32 = arith.constant 0 : i32
    %c0_i32_0 = arith.constant 0 : i32
    %c0_i32_1 = arith.constant 0 : i32
    return %c0_i32, %c0_i32_0 : i32, i32
  }
  func.func @transform_9(%arg0: i32) -> (i32, i32) {
    %c0_i32 = arith.constant 0 : i32
    %c0_i32_0 = arith.constant 0 : i32
    %c0_i32_1 = arith.constant 0 : i32
    return %c0_i32, %c0_i32_0 : i32, i32
  }
  func.func @transform_10(%arg0: i32) -> (i32, i32) {
    %c0_i32 = arith.constant 0 : i32
    %c0_i32_0 = arith.constant 0 : i32
    %c0_i32_1 = arith.constant 0 : i32
    return %c0_i32, %c0_i32_0 : i32, i32
  }
  func.func @transform_11(%arg0: i32) -> (i32, i32, i32) {
    %c0_i32 = arith.constant 0 : i32
    %c0_i32_0 = arith.constant 0 : i32
    %c0_i32_1 = arith.constant 0 : i32
    return %arg0, %c0_i32, %c0_i32_0 : i32, i32, i32
  }
}

</mosaic_0001>

<bundles_post_ra>
// kernel: tpu_custom_call.1
= control target key start
LH: loop header
LB: loop body
LE: loop exit
PB: predicated region body
PF: predicated region fallthrough
CT: control target
= control target key end

     0   :  { %s5006_s17 = smov 0   ;;  %s6181_s0 = inlined_call_operand.vmem [shape: f32[2,64,32], index: 0, kind: input, shape index: {}]   ;;  %s6182_s1 = inlined_call_operand.vmem [shape: f32[2,64,32], index: 1, kind: input, shape index: {}]   ;;  %s6183_s2 = inlined_call_operand.vmem [shape: f32[2,64,32], index: 2, kind: input, shape index: {}]   ;;  %s6184_s3 = inlined_call_operand.vmem [shape: f32[3,32,32], index: 3, kind: input, shape index: {}]   ;;  %s6185_s4 = inlined_call_operand.vmem [shape: f32[3,32], index: 4, kind: input, shape index: {}]   ;;  %s6186_s5 = inlined_call_operand.vmem [shape: f32[3,32], index: 5, kind: input, shape index: {}]   ;;  %s6187_s6 = inlined_call_operand.vmem [shape: f32[3,32], index: 6, kind: input, shape index: {}]   ;;  %s6188_s7 = inlined_call_operand.vmem [shape: f32[3,32,32], index: 7, kind: input, shape index: {}]   ;;  %s6189_s8 = inlined_call_operand.vmem [shape: f32[3,32], index: 8, kind: input, shape index: {}]   ;;  %s6190_s9 = inlined_call_operand.vmem [shape: f32[32,32], index: 9, kind: input, shape index: {}]   ;;  %s6191_s10 = inlined_call_operand.vmem [shape: f32[1,32], index: 10, kind: input, shape index: {}]   ;;  %s6192_s11 = inlined_call_operand.vmem [shape: f32[2,64,32], index: 11, kind: output, shape index: {}]  }
   0x1 LB: > { %s3654_s18 = sadd.s32 4294967295, %s4938_s17   ;;  %p3658_p0 = scmp.ge.s32.totalorder %s4938_s17, 1  ;;  %s4938_s17 = sphi %s5006_s17, %s21_s17  }
   0x2   : > { %p357_p1 = scmp.lt.s32.totalorder %s4938_s17, 3 }
   0x4   : > { %p358_p2 = pnand %p3658_p0, %p357_p1 }
   0x5   : > { %v451_v0 = vld [vmem:[%s6184_s3] sm:$0xff] (!%p358_p2)  ;;  %v452_v1 = vld [vmem:[%s6184_s3 + $0x8] sm:$0xff] (!%p358_p2)  ;;  %v453_v2 = vld [vmem:[%s6184_s3 + $0x10] sm:$0xff] (!%p358_p2)  ;;  %p407_p3 = scmp.lt.s32.totalorder (!%p358_p2), %s3654_s18, 1  ;;  %vm488_vm0 = vcmask (!%p358_p2), 261120   ;;  %v484_v42 = vlaneseq (!%p358_p2)  ;;  %vm1692_vm1 = vcmask (!%p358_p2), 64512  }
   0x6   : > { %361 = sbr.rel (%p358_p2) target bundleno = 3770 (0xeba), region = 64  ;;  %v4402_v3 = vpack.c.bf16 (!%p358_p2), %v452_v1, %v451_v0  ;;  %v454_v4 = vld [vmem:[%s6184_s3 + $0x18] sm:$0xff] (!%p358_p2)  ;;  %v455_v6 = vld [vmem:[%s6184_s3 + $0x20] sm:$0xff] (!%p358_p2)  ;;  %v456_v7 = vld [vmem:[%s6184_s3 + $0x28] sm:$0xff] (!%p358_p2)  ;;  %vm1846_vm3 = vcmask (!%p358_p2), 523264   ;;  %s4942_s19 = smov (!%p358_p2), 104  }
   0x7   : > { %v4406_v5 = vpack.c.bf16 (!%p358_p2), %v454_v4, %v453_v2  ;;  %v4418_v8 = vpack.c.bf16 (!%p358_p2), %v456_v7, %v455_v6  ;;  %v457_v10 = vld [vmem:[%s6184_s3 + $0x30] sm:$0xff] (!%p358_p2)  ;;  %v458_v11 = vld [vmem:[%s6184_s3 + $0x38] sm:$0xff] (!%p358_p2)  ;;  %v459_v18 = vld [vmem:[%s6184_s3 + $0x40] sm:$0xff] (!%p358_p2)  ;;  %v485_v43 = vshrl.u32 (!%p358_p2), %v484_v42, 7  ;;  %s4943_s20 = smov (!%p358_p2), 8   ;;  %s4944_s21 = smov (!%p358_p2), 16  }
   0x8   : > { %4403 = vmatprep.subr.bf16.mxu0 (!%p358_p2), %v4402_v3  ;;  %4618 = vmatprep.subr.bf16.mxu1 (!%p358_p2), %v4402_v3  ;;  %v4422_v16 = vpack.c.bf16 (!%p358_p2), %v458_v11, %v457_v10  ;;  %v460_v19 = vld [vmem:[%s6184_s3 + $0x48] sm:$0xff] (!%p358_p2)  ;;  %v461_v24 = vld [vmem:[%s6184_s3 + $0x50] sm:$0xff] (!%p358_p2)  ;;  %v462_v25 = vld [vmem:[%s6184_s3 + $0x58] sm:$0xff] (!%p358_p2)  ;;  %s4945_s29 = smov (!%p358_p2), 24   ;;  %vm3406_vm4 = vcmask (!%p358_p2), 130048   ;;  %vm3415_vm5 = vcmask (!%p358_p2), 195584  }
   0x9   : > { %4405 = vmatpush3.bf16.msra.mxu0 (!%p358_p2), %v4402_v3  ;;  %4620 = vmatpush3.bf16.msra.mxu1 (!%p358_p2), %v4402_v3  ;;  %v4434_v23 = vpack.c.bf16 (!%p358_p2), %v460_v19, %v459_v18  ;;  %v4438_v28 = vpack.c.bf16 (!%p358_p2), %v462_v25, %v461_v24  ;;  %v5098_v44 = vsub.s32 (!%p358_p2), 0, %v485_v43  ;;  %v463_v45 = vld [vmem:[%s6185_s4] sm:$0x7] (!%p358_p2)  ;;  %v5114_v60 = vsub.s32 (!%p358_p2), 1, %v485_v43  ;;  %vm5568_vm2 = vmpackc.low (!%p358_p2), %vm1692_vm1, %vm1692_vm1 }
   0xa   : > { %4407 = vmatprep.subr.bf16.mxu0 (!%p358_p2), %v4406_v5  ;;  %4619 = vmatprep.subr.bf16.mxu1 (!%p358_p2), %v4406_v5 }
   0xb   : > { %v487_v46 = vrot.slane (!%p358_p2), %v463_v45, %v5098_v44  ;;  %v883_v4 = vrot.slane (!%p358_p2), %v463_v45, %v5114_v60 }
   0xd   : > { %s6196_s18 = smov (!%p407_p3, %s3654_s18), 1  ;;  %4409 = vmatpush3.bf16.msra.mxu0 %v4406_v5  ;;  %4621 = vmatpush3.bf16.msra.mxu1 %v4406_v5 }
   0xe   : > { %s5032_s12 = sshll.u32 %s6196_s18, 6  ;;  %4419 = vmatprep.subr.bf16.mxu0 %v4418_v8 }
   0xf   : > { %s421_s15 = scalar_lea.vmem %s6183_s2, %s5032_s12  ;;  %s5050_s23 = scalar_lea.vmem %s6181_s0, %s5032_s12 }
  0x10   : > { %v443_v9 = vld [vmem:[%s421_s15] sm:$0xff]  ;;  %v444_v13 = vld [vmem:[%s421_s15 + $0x8] sm:$0xff]  ;;  %v445_v15 = vld [vmem:[%s421_s15 + $0x10] sm:$0xff]  ;;  %s416_s16 = scalar_lea.vmem %s6182_s1, %s5032_s12 }
  0x11   : > { %4046 = vmatprep.mubr.msk.f32.mxu0 %vm488_vm0, %v443_v9  ;;  %v447_v12 = vld [vmem:[%s421_s15 + $0x20] sm:$0xff]  ;;  %v448_v14 = vld [vmem:[%s421_s15 + $0x28] sm:$0xff]  ;;  %v449_v17 = vld [vmem:[%s421_s15 + $0x30] sm:$0xff] }
  0x12   : > { %4052 = vmatprep.mubr.msk.f32.mxu1 %vm488_vm0, %v447_v12  ;;  %4047 = vmatmul.mubr.msk.f32.vlgmr.msra.gmra.mrb[0].mxu0 %vm488_vm0, %v444_v13  ;;  %v446_v20 = vld [vmem:[%s421_s15 + $0x18] sm:$0xff]  ;;  %v427_v22 = vld [vmem:[%s5050_s23] sm:$0xff]  ;;  %v428_v26 = vld [vmem:[%s5050_s23 + $0x8] sm:$0xff] }
  0x13   : > { %4053 = vmatmul.mubr.msk.f32.vlgmr.msra.gmra.mrb[0].mxu1 %vm488_vm0, %v448_v14  ;;  %4049 = vmatprep.mubr.msk.f32.mxu0 %vm488_vm0, %v445_v15  ;;  %v450_v21 = vld [vmem:[%s421_s15 + $0x38] sm:$0xff]  ;;  %v429_v27 = vld [vmem:[%s5050_s23 + $0x10] sm:$0xff]  ;;  %v431_v30 = vld [vmem:[%s5050_s23 + $0x20] sm:$0xff]  ;;  %s4940_s15 = smov 120  }
  0x14   : > { %4421 = vmatpush3.bf16.msra.mxu0 %v4418_v8  ;;  %4055 = vmatprep.mubr.msk.f32.mxu1 %vm488_vm0, %v449_v17  ;;  %v430_v29 = vld [vmem:[%s5050_s23 + $0x18] sm:$0xff]  ;;  %v432_v31 = vld [vmem:[%s5050_s23 + $0x28] sm:$0xff]  ;;  %v433_v32 = vld [vmem:[%s5050_s23 + $0x30] sm:$0xff] }
  0x15   : > { %4423 = vmatprep.subr.bf16.mxu0 %v4422_v16  ;;  %v434_v33 = vld [vmem:[%s5050_s23 + $0x38] sm:$0xff]  ;;  %v435_v34 = vld [vmem:[%s416_s16] sm:$0xff]  ;;  %v436_v35 = vld [vmem:[%s416_s16 + $0x8] sm:$0xff] }
  0x16   : > { %4050 = vmatmul.mubr.msk.f32.gmra.mrb[2].mxu0 %vm488_vm0, %v446_v20  ;;  %v437_v36 = vld [vmem:[%s416_s16 + $0x10] sm:$0xff]  ;;  %v438_v37 = vld [vmem:[%s416_s16 + $0x18] sm:$0xff]  ;;  %v439_v38 = vld [vmem:[%s416_s16 + $0x20] sm:$0xff] }
  0x17   : > { %4056 = vmatmul.mubr.msk.f32.gmra.mrb[2].mxu1 %vm488_vm0, %v450_v21  ;;  %4086 = vmatprep.mubr.msk.f32.mxu0 %vm488_vm0, %v427_v22  ;;  %v440_v39 = vld [vmem:[%s416_s16 + $0x28] sm:$0xff]  ;;  %v441_v40 = vld [vmem:[%s416_s16 + $0x30] sm:$0xff]  ;;  %v442_v41 = vld [vmem:[%s416_s16 + $0x38] sm:$0xff]  ;;  %s4941_s16 = smov 112  }
  0x18   : > { %4425 = vmatpush3.bf16.msra.mxu0 %v4422_v16 }
  0x19   : > { %4435 = vmatprep.subr.bf16.mxu0 %v4434_v23 }
  0x1b   : > { %4087 = vmatmul.mubr.msk.f32.vlgmr.msra.gmra.mrb[4].mxu0 %vm488_vm0, %v428_v26 }
  0x1c   : > { %4089 = vmatprep.mubr.msk.f32.mxu0 %vm488_vm0, %v429_v27  ;;  %4437 = vmatpush3.bf16.msra.mxu0 %v4434_v23  ;;  %v5151_v23 = vsub.s32 2, %v485_v43 }
  0x1d   : > { %4439 = vmatprep.subr.bf16.mxu0 %v4438_v28 }
  0x1f   : > { %4090 = vmatmul.mubr.msk.f32.gmra.mrb[6].mxu0 %vm488_vm0, %v430_v29 }
  0x20   : > { %4092 = vmatprep.mubr.msk.f32.mxu0 %vm488_vm0, %v431_v30  ;;  %4441 = vmatpush3.bf16.msra.mxu0 %v4438_v28  ;;  %v1285_v30 = vrot.slane %v463_v45, %v5151_v23 }
  0x23   : > { %4093 = vmatmul.mubr.msk.f32.gmra.mrb[8].mxu0 %vm488_vm0, %v432_v31 }
  0x24   : > { %4095 = vmatprep.mubr.msk.f32.mxu0 %vm488_vm0, %v433_v32 }
  0x27   : > { %4096 = vmatmul.mubr.msk.f32.gmra.mrb[10].mxu0 %vm488_vm0, %v434_v33 }
  0x28   : > { %4126 = vmatprep.mubr.msk.f32.mxu0 %vm488_vm0, %v435_v34 }
  0x2b   : > { %4127 = vmatmul.mubr.msk.f32.vlgmr.msra.gmra.mrb[12].mxu0 %vm488_vm0, %v436_v35 }
  0x2c   : > { %4129 = vmatprep.mubr.msk.f32.mxu0 %vm488_vm0, %v437_v36 }
  0x2f   : > { %4130 = vmatmul.mubr.msk.f32.gmra.mrb[14].mxu0 %vm488_vm0, %v438_v37 }
  0x30   : > { %4132 = vmatprep.mubr.msk.f32.mxu0 %vm488_vm0, %v439_v38 }
  0x33   : > { %4133 = vmatmul.mubr.msk.f32.gmra.mrb[16].mxu0 %vm488_vm0, %v440_v39 }
  0x34   : > { %4135 = vmatprep.mubr.msk.f32.mxu0 %vm488_vm0, %v441_v40 }
  0x37   : > { %4136 = vmatmul.mubr.msk.f32.gmra.mrb[18].mxu0 %vm488_vm0, %v442_v41 }
  0xe5   : > { %v4048_v47 = vpop.f32.mrb[0].mxu0 }
  0xe6   : > { %v4054_v48 = vpop.f32.mrb[0].mxu1  ;;  %v579_v49 = vpop.f32.mrb[1].mxu0  ;;  %v5106_v52 = vadd.f32 %v4048_v47, %v487_v46 }
  0xe7   : > { %v599_v50 = vpop.f32.mrb[1].mxu1  ;;  %v5104_v51 = vadd.f32 %v579_v49, %v487_v46  ;;  %v5127_v5 = vadd.f32 %v4054_v48, %v487_v46 }
  0xe8   : > { %v5112_v59 = vadd.f32 %v599_v50, %v487_v46  ;;  %v621_v63 = vsel %vm488_vm0, %v5106_v52, 0.0 }
  0xe9   : > { %v4051_v53 = vpop.f32.mrb[2].mxu0  ;;  %v618_v54 = vsel %vm488_vm0, %v5104_v51, 0.0  ;;  %v633_v12 = vsel %vm488_vm0, %v5127_v5, 0.0 }
  0xea   : > { %v4057_v55 = vpop.f32.mrb[2].mxu1  ;;  %v589_v56 = vpop.f32.mrb[3].mxu0  ;;  %619 = vadd.xlane.f32.xlu0 %v618_v54  ;;  %v5116_v61 = vadd.f32 %v4051_v53, %v487_v46  ;;  %v630_v3 = vsel %vm488_vm0, %v5112_v59, 0.0 }
  0xeb   : > { %v609_v57 = vpop.f32.mrb[3].mxu1  ;;  %v5110_v58 = vadd.f32 %v589_v56, %v487_v46  ;;  %v5135_v11 = vadd.f32 %v4057_v55, %v487_v46 }
  0xec   : > { %v5122_v2 = vadd.f32 %v609_v57, %v487_v46  ;;  %v627_v6 = vsel %vm488_vm0, %v5116_v61, 0.0 }
  0xed   : > { %v624_v62 = vsel %vm488_vm0, %v5110_v58, 0.0  ;;  %v639_v18 = vsel %vm488_vm0, %v5135_v11, 0.0 }
  0xee   : > { %v4088_v0 = vpop.f32.mrb[4].mxu0  ;;  %625 = vadd.xlane.f32.xlu1 %v624_v62  ;;  %622 = vadd.xlane.f32.xlu0 %v621_v63  ;;  %v636_v9 = vsel %vm488_vm0, %v5122_v2, 0.0 }
  0xef   : > { %v974_v1 = vpop.f32.mrb[5].mxu0  ;;  %v5143_v17 = vadd.f32 %v4088_v0, %v883_v4 }
  0xf0   : > { %v5133_v10 = vadd.f32 %v974_v1, %v883_v4 }
  0xf1   : > { %v1016_v25 = vsel %vm488_vm0, %v5143_v17, 0.0 }
  0xf2   : > { %v4091_v7 = vpop.f32.mrb[6].mxu0  ;;  %628 = vadd.xlane.f32.xlu1 %v627_v6  ;;  %631 = vadd.xlane.f32.xlu0 %v630_v3  ;;  %v1013_v16 = vsel %vm488_vm0, %v5133_v10, 0.0 }
  0xf3   : > { %v984_v8 = vpop.f32.mrb[7].mxu0  ;;  %v5153_v24 = vadd.f32 %v4091_v7, %v883_v4 }
  0xf4   : > { %v5139_v15 = vadd.f32 %v984_v8, %v883_v4 }
  0xf5   : > { %v1022_v32 = vsel %vm488_vm0, %v5153_v24, 0.0 }
  0xf6   : > { %v4094_v13 = vpop.f32.mrb[8].mxu0  ;;  %634 = vadd.xlane.f32.xlu1 %v633_v12  ;;  %637 = vadd.xlane.f32.xlu0 %v636_v9  ;;  %v1019_v22 = vsel %vm488_vm0, %v5139_v15, 0.0 }
  0xf7   : > { %v994_v14 = vpop.f32.mrb[9].mxu0  ;;  %v5162_v31 = vadd.f32 %v4094_v13, %v883_v4 }
  0xf8   : > { %v5147_v21 = vadd.f32 %v994_v14, %v883_v4 }
  0xf9   : > { %v1028_v38 = vsel %vm488_vm0, %v5162_v31, 0.0 }
  0xfa   : > { %v4097_v19 = vpop.f32.mrb[10].mxu0  ;;  %640 = vadd.xlane.f32.xlu1 %v639_v18  ;;  %1014 = vadd.xlane.f32.xlu0 %v1013_v16  ;;  %v1025_v29 = vsel %vm488_vm0, %v5147_v21, 0.0 }
  0xfb   : > { %v1004_v20 = vpop.f32.mrb[11].mxu0  ;;  %v5170_v37 = vadd.f32 %v4097_v19, %v883_v4 }
  0xfc   : > { %v5157_v28 = vadd.f32 %v1004_v20, %v883_v4 }
  0xfd   : > { %v1034_v45 = vsel %vm488_vm0, %v5170_v37, 0.0 }
  0xfe   : > { %v4128_v26 = vpop.f32.mrb[12].mxu0  ;;  %1017 = vadd.xlane.f32.xlu1 %v1016_v25  ;;  %1020 = vadd.xlane.f32.xlu0 %v1019_v22  ;;  %v1031_v36 = vsel %vm488_vm0, %v5157_v28, 0.0 }
  0xff   : > { %v1376_v27 = vpop.f32.mrb[13].mxu0  ;;  %v5178_v43 = vadd.f32 %v4128_v26, %v1285_v30 }
 0x100   : > { %v5166_v35 = vadd.f32 %v1376_v27, %v1285_v30 }
 0x101   : > { %v1418_v53 = vsel %vm488_vm0, %v5178_v43, 0.0 }
 0x102   : > { %v4131_v33 = vpop.f32.mrb[14].mxu0  ;;  %1023 = vadd.xlane.f32.xlu1 %v1022_v32  ;;  %1026 = vadd.xlane.f32.xlu0 %v1025_v29  ;;  %v1415_v42 = vsel %vm488_vm0, %v5166_v35, 0.0 }
 0x103   : > { %v1386_v34 = vpop.f32.mrb[15].mxu0  ;;  %v5182_v48 = vadd.f32 %v4131_v33, %v1285_v30 }
 0x104   : > { %v5174_v41 = vadd.f32 %v1386_v34, %v1285_v30 }
 0x105   : > { %v1424_v55 = vsel %vm488_vm0, %v5182_v48, 0.0 }
 0x106   : > { %v4134_v39 = vpop.f32.mrb[16].mxu0  ;;  %1029 = vadd.xlane.f32.xlu1 %v1028_v38  ;;  %1032 = vadd.xlane.f32.xlu0 %v1031_v36  ;;  %v1421_v50 = vsel %vm488_vm0, %v5174_v41, 0.0 }
 0x107   : > { %v1396_v40 = vpop.f32.mrb[17].mxu0  ;;  %v5190_v54 = vadd.f32 %v4134_v39, %v1285_v30 }
 0x108   : > { %v5184_v49 = vadd.f32 %v1396_v40, %v1285_v30 }
 0x109   : > { %v1430_v63 = vsel %vm488_vm0, %v5190_v54, 0.0 }
 0x10a   : > { %v4137_v46 = vpop.f32.mrb[18].mxu0  ;;  %1035 = vadd.xlane.f32.xlu1 %v1034_v45  ;;  %1416 = vadd.xlane.f32.xlu0 %v1415_v42  ;;  %v1427_v57 = vsel %vm488_vm0, %v5184_v49, 0.0 }
 0x10b   : > { %v1406_v47 = vpop.f32.mrb[19].mxu0  ;;  %v5198_v62 = vadd.f32 %v4137_v46, %v1285_v30 }
 0x10c   : > { %v5194_v56 = vadd.f32 %v1406_v47, %v1285_v30 }
 0x10d   : > { %v1436_v1 = vsel %vm488_vm0, %v5198_v62, 0.0 }
 0x10e   : > { %1419 = vadd.xlane.f32.xlu1 %v1418_v53  ;;  %1422 = vadd.xlane.f32.xlu0 %v1421_v50  ;;  %v1433_v0 = vsel %vm488_vm0, %v5194_v56, 0.0 }
 0x112   : > { %1425 = vadd.xlane.f32.xlu1 %v1424_v55  ;;  %1428 = vadd.xlane.f32.xlu0 %v1427_v57 }
 0x116   : > { %1431 = vadd.xlane.f32.xlu1 %v1430_v63  ;;  %1434 = vadd.xlane.f32.xlu0 %v1433_v0 }
 0x11a   : > { %1437 = vadd.xlane.f32.xlu1 %v1436_v1 }
 0x177   : > { %v620_v3 = vpop.xlane.xlu0 %619 }
 0x178   : > { %v643_v4 = vmul.f32 0.03125, %v620_v3 }
 0x17a   : > { %v5207_v6 = vsub.f32 %v5104_v51, %v643_v4 }
 0x17b   : > { %v626_v7 = vpop.xlane.xlu1 %625  ;;  %v623_v8 = vpop.xlane.xlu0 %622 }
 0x17c   : > { %v645_v9 = vmul.f32 0.03125, %v626_v7  ;;  %v644_v12 = vmul.f32 0.03125, %v623_v8  ;;  %v659_v13 = vmul.f32 %v5207_v6, %v5207_v6 }
 0x17e   : > { %v5212_v14 = vsub.f32 %v5110_v58, %v645_v9  ;;  %v5215_v16 = vsub.f32 %v5106_v52, %v644_v12  ;;  %v667_v18 = vsel %vm488_vm0, %v659_v13, 0.0 }
 0x17f   : > { %v629_v19 = vpop.xlane.xlu1 %628  ;;  %v632_v20 = vpop.xlane.xlu0 %631  ;;  %668 = vadd.xlane.f32.xlu0 %v667_v18 }
 0x180   : > { %v646_v22 = vmul.f32 0.03125, %v629_v19  ;;  %v647_v25 = vmul.f32 0.03125, %v632_v20  ;;  %v660_v26 = vmul.f32 %v5215_v16, %v5215_v16  ;;  %v661_v27 = vmul.f32 %v5212_v14, %v5212_v14 }
 0x182   : > { %v5223_v29 = vsub.f32 %v5116_v61, %v646_v22  ;;  %v5226_v30 = vsub.f32 %v5112_v59, %v647_v25  ;;  %v670_v32 = vsel %vm488_vm0, %v660_v26, 0.0  ;;  %v673_v33 = vsel %vm488_vm0, %v661_v27, 0.0 }
 0x183   : > { %v635_v34 = vpop.xlane.xlu1 %634  ;;  %v638_v36 = vpop.xlane.xlu0 %637  ;;  %671 = vadd.xlane.f32.xlu1 %v670_v32  ;;  %674 = vadd.xlane.f32.xlu0 %v673_v33 }
 0x184   : > { %v648_v38 = vmul.f32 0.03125, %v635_v34  ;;  %v649_v39 = vmul.f32 0.03125, %v638_v36  ;;  %v662_v40 = vmul.f32 %v5223_v29, %v5223_v29  ;;  %v663_v42 = vmul.f32 %v5226_v30, %v5226_v30 }
 0x186   : > { %v5235_v45 = vsub.f32 %v5127_v5, %v648_v38  ;;  %v5238_v46 = vsub.f32 %v5122_v2, %v649_v39  ;;  %v676_v47 = vsel %vm488_vm0, %v662_v40, 0.0  ;;  %v679_v50 = vsel %vm488_vm0, %v663_v42, 0.0 }
 0x187   : > { %v641_v53 = vpop.xlane.xlu1 %640  ;;  %677 = vadd.xlane.f32.xlu1 %v676_v47  ;;  %680 = vadd.xlane.f32.xlu0 %v679_v50  ;;  %v1015_v55 = vpop.xlane.xlu0 %1014 }
 0x188   : > { %v650_v57 = vmul.f32 0.03125, %v641_v53  ;;  %v1037_v63 = vmul.f32 0.03125, %v1015_v55  ;;  %v664_v0 = vmul.f32 %v5235_v45, %v5235_v45  ;;  %v665_v1 = vmul.f32 %v5238_v46, %v5238_v46 }
 0x18a   : > { %v5247_v3 = vsub.f32 %v5135_v11, %v650_v57  ;;  %v5250_v4 = vsub.f32 %v5133_v10, %v1037_v63  ;;  %v682_v7 = vsel %vm488_vm0, %v664_v0, 0.0  ;;  %v685_v8 = vsel %vm488_vm0, %v665_v1, 0.0 }
 0x18b   : > { %v1018_v9 = vpop.xlane.xlu1 %1017  ;;  %683 = vadd.xlane.f32.xlu1 %v682_v7  ;;  %686 = vadd.xlane.f32.xlu0 %v685_v8  ;;  %v1021_v12 = vpop.xlane.xlu0 %1020 }
 0x18c   : > { %v1038_v13 = vmul.f32 0.03125, %v1018_v9  ;;  %v1039_v18 = vmul.f32 0.03125, %v1021_v12  ;;  %v666_v19 = vmul.f32 %v5247_v3, %v5247_v3  ;;  %v1053_v20 = vmul.f32 %v5250_v4, %v5250_v4 }
 0x18e   : > { %v5259_v22 = vsub.f32 %v5143_v17, %v1038_v13  ;;  %v5262_v10 = vsub.f32 %v5139_v15, %v1039_v18  ;;  %v688_v25 = vsel %vm488_vm0, %v666_v19, 0.0  ;;  %v1061_v26 = vsel %vm488_vm0, %v1053_v20, 0.0 }
 0x18f   : > { %v1024_v27 = vpop.xlane.xlu1 %1023  ;;  %689 = vadd.xlane.f32.xlu1 %v688_v25  ;;  %1062 = vadd.xlane.f32.xlu0 %v1061_v26  ;;  %v1027_v32 = vpop.xlane.xlu0 %1026 }
 0x190   : > { %v1040_v33 = vmul.f32 0.03125, %v1024_v27  ;;  %v1041_v34 = vmul.f32 0.03125, %v1027_v32  ;;  %v1054_v36 = vmul.f32 %v5259_v22, %v5259_v22  ;;  %v1055_v17 = vmul.f32 %v5262_v10, %v5262_v10 }
 0x192   : > { %v5271_v38 = vsub.f32 %v5153_v24, %v1040_v33  ;;  %v5274_v15 = vsub.f32 %v5147_v21, %v1041_v34  ;;  %v1064_v39 = vsel %vm488_vm0, %v1054_v36, 0.0  ;;  %v1067_v40 = vsel %vm488_vm0, %v1055_v17, 0.0  ;;  %v467_v33 = vld [vmem:[%s6188_s7 + $0x8] sm:$0xff] }
 0x193   : > { %v1030_v42 = vpop.xlane.xlu1 %1029  ;;  %1065 = vadd.xlane.f32.xlu1 %v1064_v39  ;;  %1068 = vadd.xlane.f32.xlu0 %v1067_v40  ;;  %v1033_v47 = vpop.xlane.xlu0 %1032 }
 0x194   : > { %v1042_v50 = vmul.f32 0.03125, %v1030_v42  ;;  %v1043_v53 = vmul.f32 0.03125, %v1033_v47  ;;  %v1056_v55 = vmul.f32 %v5271_v38, %v5271_v38  ;;  %v1057_v24 = vmul.f32 %v5274_v15, %v5274_v15 }
 0x196   : > { %v5283_v57 = vsub.f32 %v5162_v31, %v1042_v50  ;;  %v5286_v21 = vsub.f32 %v5157_v28, %v1043_v53  ;;  %v1070_v63 = vsel %vm488_vm0, %v1056_v55, 0.0  ;;  %v1073_v0 = vsel %vm488_vm0, %v1057_v24, 0.0  ;;  %v469_v24 = vld [vmem:[%s6188_s7 + $0x18] sm:$0xff] }
 0x197   : > { %v1036_v1 = vpop.xlane.xlu1 %1035  ;;  %1071 = vadd.xlane.f32.xlu1 %v1070_v63  ;;  %1074 = vadd.xlane.f32.xlu0 %v1073_v0  ;;  %v1417_v7 = vpop.xlane.xlu0 %1416 }
 0x198   : > { %v1044_v8 = vmul.f32 0.03125, %v1036_v1  ;;  %v1439_v9 = vmul.f32 0.03125, %v1417_v7  ;;  %v1058_v12 = vmul.f32 %v5283_v57, %v5283_v57  ;;  %v1059_v31 = vmul.f32 %v5286_v21, %v5286_v21 }
 0x19a   : > { %v5295_v13 = vsub.f32 %v5170_v37, %v1044_v8  ;;  %v5298_v28 = vsub.f32 %v5166_v35, %v1439_v9  ;;  %v1076_v18 = vsel %vm488_vm0, %v1058_v12, 0.0  ;;  %v1079_v19 = vsel %vm488_vm0, %v1059_v31, 0.0  ;;  %v466_v35 = vld [vmem:[%s6188_s7] sm:$0xff] }
 0x19b   : > { %v1420_v20 = vpop.xlane.xlu1 %1419  ;;  %1077 = vadd.xlane.f32.xlu1 %v1076_v18  ;;  %1080 = vadd.xlane.f32.xlu0 %v1079_v19  ;;  %v1423_v25 = vpop.xlane.xlu0 %1422  ;;  %v4410_v34 = vpack.c.bf16 %v467_v33, %v466_v35 }
 0x19c   : > { %v1440_v26 = vmul.f32 0.03125, %v1420_v20  ;;  %v1441_v27 = vmul.f32 0.03125, %v1423_v25  ;;  %v1060_v32 = vmul.f32 %v5295_v13, %v5295_v13  ;;  %v1455_v37 = vmul.f32 %v5298_v28, %v5298_v28 }
 0x19d   : > { %4411 = vmatprep.subr.bf16.mxu1 %v4410_v34 }
 0x19e   : > { %v5313_v36 = vsub.f32 %v5178_v43, %v1440_v26  ;;  %v5316_v17 = vsub.f32 %v5174_v41, %v1441_v27  ;;  %v1082_v39 = vsel %vm488_vm0, %v1060_v32, 0.0  ;;  %v1463_v40 = vsel %vm488_vm0, %v1455_v37, 0.0  ;;  %v468_v41 = vld [vmem:[%s6188_s7 + $0x10] sm:$0xff]  ;;  %4413 = vmatpush3.bf16.msra.mxu1 %v4410_v34 }
 0x19f   : > { %v1426_v42 = vpop.xlane.xlu1 %1425  ;;  %1083 = vadd.xlane.f32.xlu1 %v1082_v39  ;;  %1464 = vadd.xlane.f32.xlu0 %v1463_v40  ;;  %v1429_v47 = vpop.xlane.xlu0 %1428  ;;  %v4414_v63 = vpack.c.bf16 %v469_v24, %v468_v41  ;;  %v470_v39 = vld [vmem:[%s6188_s7 + $0x20] sm:$0xff]  ;;  %v471_v40 = vld [vmem:[%s6188_s7 + $0x28] sm:$0xff] }
 0x1a0   : > { %v1442_v50 = vmul.f32 0.03125, %v1426_v42  ;;  %v1443_v53 = vmul.f32 0.03125, %v1429_v47  ;;  %v1456_v55 = vmul.f32 %v5313_v36, %v5313_v36  ;;  %v1457_v43 = vmul.f32 %v5316_v17, %v5316_v17 }
 0x1a1   : > { %4415 = vmatprep.subr.bf16.mxu1 %v4414_v63  ;;  %v5367_v42 = vpack.c.bf16 %v471_v40, %v470_v39 }
 0x1a2   : > { %v5331_v0 = vsub.f32 %v5182_v48, %v1442_v50  ;;  %v5334_v1 = vsub.f32 %v5184_v49, %v1443_v53  ;;  %v1466_v7 = vsel %vm488_vm0, %v1456_v55, 0.0  ;;  %v1469_v8 = vsel %vm488_vm0, %v1457_v43, 0.0  ;;  %4417 = vmatpush3.bf16.msra.mxu1 %v4414_v63 }
 0x1a3   : > { %v1432_v9 = vpop.xlane.xlu1 %1431  ;;  %1467 = vadd.xlane.f32.xlu1 %v1466_v7  ;;  %1470 = vadd.xlane.f32.xlu0 %v1469_v8  ;;  %v1435_v12 = vpop.xlane.xlu0 %1434 }
 0x1a4   : > { %v1444_v31 = vmul.f32 0.03125, %v1432_v9  ;;  %v1445_v18 = vmul.f32 0.03125, %v1435_v12  ;;  %v1458_v19 = vmul.f32 %v5331_v0, %v5331_v0  ;;  %v1459_v48 = vmul.f32 %v5334_v1, %v5334_v1  ;;  %4427 = vmatprep.subr.bf16.mxu1 %v5367_v42 }
 0x1a6   : > { %v5343_v49 = vsub.f32 %v5190_v54, %v1444_v31  ;;  %v5346_v20 = vsub.f32 %v5194_v56, %v1445_v18  ;;  %v1472_v25 = vsel %vm488_vm0, %v1458_v19, 0.0  ;;  %v1475_v26 = vsel %vm488_vm0, %v1459_v48, 0.0  ;;  %v5374_v18 = vld [vmem:[%s6186_s5] sm:$0x7] }
 0x1a7   : > { %1473 = vadd.xlane.f32.xlu1 %v1472_v25  ;;  %v1438_v27 = vpop.xlane.xlu1 %1437  ;;  %1476 = vadd.xlane.f32.xlu0 %v1475_v26 }
 0x1a8   : > { %v1446_v32 = vmul.f32 0.03125, %v1438_v27  ;;  %v1460_v37 = vmul.f32 %v5343_v49, %v5343_v49  ;;  %v1461_v35 = vmul.f32 %v5346_v20, %v5346_v20 }
 0x1aa   : > { %v5355_v54 = vsub.f32 %v5198_v62, %v1446_v32  ;;  %v1478_v56 = vsel %vm488_vm0, %v1460_v37, 0.0  ;;  %v1481_v33 = vsel %vm488_vm0, %v1461_v35, 0.0  ;;  %v5379_v37 = vld [vmem:[%s6187_s6] sm:$0x7]  ;;  %v5383_v35 = vrot.slane %v5374_v18, %v5098_v44 }
 0x1ab   : > { %1479 = vadd.xlane.f32.xlu1 %v1478_v56  ;;  %1482 = vadd.xlane.f32.xlu0 %v1481_v33 }
 0x1ac   : > { %v1462_v34 = vmul.f32 %v5355_v54, %v5355_v54 }
 0x1ae   : > { %v1484_v62 = vsel %vm488_vm0, %v1462_v34, 0.0 }
 0x1af   : > { %1485 = vadd.xlane.f32.xlu1 %v1484_v62 }
 0x20c   : > { %v669_v47 = vpop.xlane.xlu0 %668 }
 0x20d   : > { %v691_v50 = vmul.f32 0.03125, %v669_v47  ;;  %v5388_v47 = vrot.slane %v5379_v37, %v5098_v44 }
 0x20f   : > { %v699_v53 = vadd.f32 1e-05, %v691_v50 }
 0x210   : > { %v672_v55 = vpop.xlane.xlu1 %671  ;;  %v675_v43 = vpop.xlane.xlu0 %674 }
 0x211   : > { %4756 = vrsqrt.f32 %v699_v53  ;;  %v692_v41 = vmul.f32 0.03125, %v672_v55  ;;  %v693_v24 = vmul.f32 0.03125, %v675_v43 }
 0x213   : > { %v700_v63 = vadd.f32 1e-05, %v692_v41  ;;  %v701_v7 = vadd.f32 1e-05, %v693_v24 }
 0x214   : > { %v678_v8 = vpop.xlane.xlu1 %677  ;;  %v681_v9 = vpop.xlane.xlu0 %680 }
 0x215   : > { %4758 = vrsqrt.f32 %v700_v63  ;;  %v694_v12 = vmul.f32 0.03125, %v678_v8  ;;  %v695_v31 = vmul.f32 0.03125, %v681_v9 }
 0x216   : > { %4760 = vrsqrt.f32 %v701_v7 }
 0x217   : > { %v702_v19 = vadd.f32 1e-05, %v694_v12  ;;  %v703_v48 = vadd.f32 1e-05, %v695_v31 }
 0x218   : > { %v684_v25 = vpop.xlane.xlu1 %683  ;;  %v687_v26 = vpop.xlane.xlu0 %686 }
 0x219   : > { %4762 = vrsqrt.f32 %v702_v19  ;;  %v696_v27 = vmul.f32 0.03125, %v684_v25  ;;  %v697_v32 = vmul.f32 0.03125, %v687_v26  ;;  %v473_v25 = vld [vmem:[%s6188_s7 + $0x38] sm:$0xff] }
 0x21a   : > { %4764 = vrsqrt.f32 %v703_v48  ;;  %v472_v48 = vld [vmem:[%s6188_s7 + $0x30] sm:$0xff] }
 0x21b   : > { %v4757_v56 = vpop.eup %4756  ;;  %v704_v33 = vadd.f32 1e-05, %v696_v27  ;;  %v705_v34 = vadd.f32 1e-05, %v697_v32 }
 0x21c   : > { %v690_v39 = vpop.xlane.xlu1 %689  ;;  %v1063_v40 = vpop.xlane.xlu0 %1062  ;;  %v715_v62 = vmul.f32 %v4757_v56, %v5207_v6 }
 0x21d   : > { %4766 = vrsqrt.f32 %v704_v33  ;;  %v698_v50 = vmul.f32 0.03125, %v690_v39  ;;  %v1085_v53 = vmul.f32 0.03125, %v1063_v40 }
 0x21e   : > { %4768 = vrsqrt.f32 %v705_v34  ;;  %v727_v55 = vmul.f32 %v5383_v35, %v715_v62  ;;  %v4430_v62 = vpack.c.bf16 %v473_v25, %v472_v48 }
 0x21f   : > { %v4759_v43 = vpop.eup %4758  ;;  %v706_v41 = vadd.f32 1e-05, %v698_v50  ;;  %v1093_v24 = vadd.f32 1e-05, %v1085_v53 }
 0x220   : > { %v4761_v63 = vpop.eup %4760  ;;  %v716_v7 = vmul.f32 %v4759_v43, %v5215_v16  ;;  %v1066_v8 = vpop.xlane.xlu1 %1065  ;;  %v739_v6 = vadd.f32 %v5388_v47, %v727_v55  ;;  %v474_v43 = vld [vmem:[%s6188_s7 + $0x40] sm:$0xff] }
 0x221   : > { %v1069_v9 = vpop.xlane.xlu0 %1068  ;;  %4770 = vrsqrt.f32 %v706_v41  ;;  %v1086_v12 = vmul.f32 0.03125, %v1066_v8  ;;  %v717_v19 = vmul.f32 %v4761_v63, %v5212_v14  ;;  %v475_v41 = vld [vmem:[%s6188_s7 + $0x48] sm:$0xff] }
 0x222   : > { %v1087_v31 = vmul.f32 0.03125, %v1069_v9  ;;  %v728_v26 = vmul.f32 %v5383_v35, %v716_v7  ;;  %4772 = vrsqrt.f32 %v1093_v24  ;;  %4066 = vmatprep.mubr.msk.f32.mxu1 %vm488_vm0, %v739_v6  ;;  %v5420_v25 = vpack.c.bf16 %v475_v41, %v474_v43 }
 0x223   : > { %v4763_v16 = vpop.eup %4762  ;;  %v1094_v27 = vadd.f32 1e-05, %v1086_v12  ;;  %v729_v56 = vmul.f32 %v5383_v35, %v717_v19 }
 0x224   : > { %v1095_v32 = vadd.f32 1e-05, %v1087_v31  ;;  %v4765_v33 = vpop.eup %4764  ;;  %v1072_v14 = vpop.xlane.xlu1 %1071  ;;  %v740_v39 = vadd.f32 %v5388_v47, %v728_v26  ;;  %v718_v40 = vmul.f32 %v4763_v16, %v5223_v29 }
 0x225   : > { %v1075_v34 = vpop.xlane.xlu0 %1074  ;;  %4774 = vrsqrt.f32 %v1094_v27  ;;  %v1088_v50 = vmul.f32 0.03125, %v1072_v14  ;;  %v741_v55 = vadd.f32 %v5388_v47, %v729_v56  ;;  %v719_v29 = vmul.f32 %v4765_v33, %v5226_v30 }
 0x226   : > { %v1089_v53 = vmul.f32 0.03125, %v1075_v34  ;;  %4776 = vrsqrt.f32 %v1095_v32  ;;  %4067 = vmatmul.mubr.msk.f32.vlgmr.msra.gmra.mrb[4].mxu1 %vm488_vm0, %v740_v39  ;;  %v730_v24 = vmul.f32 %v5383_v35, %v718_v40  ;;  %v5429_v34 = vrot.slane %v5374_v18, %v5114_v60 }
 0x227   : > { %v4767_v63 = vpop.eup %4766  ;;  %v1096_v7 = vadd.f32 1e-05, %v1088_v50  ;;  %4069 = vmatprep.mubr.msk.f32.mxu1 %vm488_vm0, %v741_v55  ;;  %4429 = vmatpush3.bf16.msra.mxu1 %v5367_v42  ;;  %v731_v19 = vmul.f32 %v5383_v35, %v719_v29 }
 0x228   : > { %v1097_v8 = vadd.f32 1e-05, %v1089_v53  ;;  %v4769_v9 = vpop.eup %4768  ;;  %v1078_v6 = vpop.xlane.xlu1 %1077  ;;  %v742_v31 = vadd.f32 %v5388_v47, %v730_v24  ;;  %v720_v48 = vmul.f32 %v4767_v63, %v5235_v45  ;;  %4431 = vmatprep.subr.bf16.mxu1 %v4430_v62  ;;  %v5441_v24 = vrot.slane %v5379_v37, %v5114_v60 }
 0x229   : > { %v1081_v12 = vpop.xlane.xlu0 %1080  ;;  %4778 = vrsqrt.f32 %v1096_v7  ;;  %v1090_v30 = vmul.f32 0.03125, %v1078_v6  ;;  %v721_v16 = vmul.f32 %v4769_v9, %v5238_v46  ;;  %v743_v42 = vadd.f32 %v5388_v47, %v731_v19 }
 0x22a   : > { %v1091_v26 = vmul.f32 0.03125, %v1081_v12  ;;  %4780 = vrsqrt.f32 %v1097_v8  ;;  %4070 = vmatmul.mubr.msk.f32.gmra.mrb[6].mxu1 %vm488_vm0, %v742_v31  ;;  %v732_v27 = vmul.f32 %v5383_v35, %v720_v48  ;;  %v476_v48 = vld [vmem:[%s6188_s7 + $0x50] sm:$0xff] }
 0x22b   : > { %v4771_v32 = vpop.eup %4770  ;;  %v1098_v56 = vadd.f32 1e-05, %v1090_v30  ;;  %v733_v45 = vmul.f32 %v5383_v35, %v721_v16  ;;  %4433 = vmatpush3.bf16.msra.mxu1 %v4430_v62  ;;  %4072 = vmatprep.mubr.msk.f32.mxu1 %vm488_vm0, %v743_v42  ;;  %v477_v30 = vld [vmem:[%s6188_s7 + $0x58] sm:$0xff] }
 0x22c   : > { %v1099_v33 = vadd.f32 1e-05, %v1091_v26  ;;  %v4773_v14 = vpop.eup %4772  ;;  %v1084_v46 = vpop.xlane.xlu1 %1083  ;;  %v744_v40 = vadd.f32 %v5388_v47, %v732_v27  ;;  %v722_v50 = vmul.f32 %v4771_v32, %v5247_v3  ;;  %4443 = vmatprep.subr.bf16.mxu1 %v5420_v25 }
 0x22d   : > { %v1465_v39 = vpop.xlane.xlu0 %1464  ;;  %4782 = vrsqrt.f32 %v1098_v56  ;;  %v1092_v53 = vmul.f32 0.03125, %v1084_v46  ;;  %v745_v62 = vadd.f32 %v5388_v47, %v733_v45  ;;  %v1109_v41 = vmul.f32 %v4773_v14, %v5250_v4 }
 0x22e   : > { %v1487_v55 = vmul.f32 0.03125, %v1465_v39  ;;  %4784 = vrsqrt.f32 %v1099_v33  ;;  %4073 = vmatmul.mubr.msk.f32.gmra.mrb[8].mxu1 %vm488_vm0, %v744_v40  ;;  %v734_v43 = vmul.f32 %v5383_v35, %v722_v50  ;;  %v4446_v14 = vpack.c.bf16 %v477_v30, %v476_v48 }
 0x22f   : > { %v4775_v29 = vpop.eup %4774  ;;  %v1100_v3 = vadd.f32 1e-05, %v1092_v53  ;;  %4075 = vmatprep.mubr.msk.f32.mxu1 %vm488_vm0, %v745_v62  ;;  %v1121_v35 = vmul.f32 %v5429_v34, %v1109_v41 }
 0x230   : > { %v1495_v63 = vadd.f32 1e-05, %v1487_v55  ;;  %v4777_v7 = vpop.eup %4776  ;;  %v1110_v8 = vmul.f32 %v4775_v29, %v5259_v22  ;;  %v1468_v9 = vpop.xlane.xlu1 %1467  ;;  %v746_v12 = vadd.f32 %v5388_v47, %v734_v43 }
 0x231   : > { %v1471_v6 = vpop.xlane.xlu0 %1470  ;;  %4786 = vrsqrt.f32 %v1100_v3  ;;  %v1488_v4 = vmul.f32 0.03125, %v1468_v9  ;;  %v1111_v19 = vmul.f32 %v4777_v7, %v5262_v10  ;;  %v1133_v47 = vadd.f32 %v5441_v24, %v1121_v35 }
 0x232   : > { %v1489_v31 = vmul.f32 0.03125, %v1471_v6  ;;  %v1122_v22 = vmul.f32 %v5429_v34, %v1110_v8  ;;  %4788 = vrsqrt.f32 %v1495_v63  ;;  %4076 = vmatmul.mubr.msk.f32.gmra.mrb[10].mxu1 %vm488_vm0, %v746_v12  ;;  %v1522_v35 = vrot.slane %v5374_v18, %v5151_v23 }
 0x233   : > { %v4779_v26 = vpop.eup %4778  ;;  %v1496_v16 = vadd.f32 1e-05, %v1488_v4  ;;  %v1123_v10 = vmul.f32 %v5429_v34, %v1111_v19  ;;  %4106 = vmatprep.mubr.msk.f32.mxu1 %vm488_vm0, %v1133_v47 }
 0x234   : > { %v1497_v42 = vadd.f32 1e-05, %v1489_v31  ;;  %v4781_v27 = vpop.eup %4780  ;;  %v1474_v32 = vpop.xlane.xlu1 %1473  ;;  %v1134_v33 = vadd.f32 %v5441_v24, %v1122_v22  ;;  %v1112_v45 = vmul.f32 %v4779_v26, %v5271_v38  ;;  %v1534_v22 = vrot.slane %v5379_v37, %v5151_v23 }
 0x235   : > { %v1477_v56 = vpop.xlane.xlu0 %1476  ;;  %4790 = vrsqrt.f32 %v1496_v16  ;;  %v1490_v46 = vmul.f32 0.03125, %v1474_v32  ;;  %v1135_v40 = vadd.f32 %v5441_v24, %v1123_v10  ;;  %v1113_v53 = vmul.f32 %v4781_v27, %v5274_v15 }
 0x236   : > { %v1491_v39 = vmul.f32 0.03125, %v1477_v56  ;;  %4792 = vrsqrt.f32 %v1497_v42  ;;  %4107 = vmatmul.mubr.msk.f32.vlgmr.msra.gmra.mrb[12].mxu1 %vm488_vm0, %v1134_v33  ;;  %v1124_v50 = vmul.f32 %v5429_v34, %v1112_v45 }
 0x237   : > { %v4783_v55 = vpop.eup %4782  ;;  %v1498_v62 = vadd.f32 1e-05, %v1490_v46  ;;  %4109 = vmatprep.mubr.msk.f32.mxu1 %vm488_vm0, %v1135_v40  ;;  %4445 = vmatpush3.bf16.msra.mxu1 %v5420_v25  ;;  %v1125_v63 = vmul.f32 %v5429_v34, %v1113_v53 }
 0x238   : > { %v1499_v43 = vadd.f32 1e-05, %v1491_v39  ;;  %v4785_v38 = vpop.eup %4784  ;;  %v1480_v41 = vpop.xlane.xlu1 %1479  ;;  %v1136_v3 = vadd.f32 %v5441_v24, %v1124_v50  ;;  %v1114_v7 = vmul.f32 %v4783_v55, %v5283_v57  ;;  %4447 = vmatprep.subr.bf16.mxu1 %v4446_v14 }
 0x239   : > { %v1483_v29 = vpop.xlane.xlu0 %1482  ;;  %4794 = vrsqrt.f32 %v1498_v62  ;;  %v1492_v8 = vmul.f32 0.03125, %v1480_v41  ;;  %v1115_v9 = vmul.f32 %v4785_v38, %v5286_v21  ;;  %v1137_v25 = vadd.f32 %v5441_v24, %v1125_v63 }
 0x23a   : > { %v1493_v15 = vmul.f32 0.03125, %v1483_v29  ;;  %4796 = vrsqrt.f32 %v1499_v43  ;;  %4110 = vmatmul.mubr.msk.f32.gmra.mrb[14].mxu1 %vm488_vm0, %v1136_v3  ;;  %v1126_v6 = vmul.f32 %v5429_v34, %v1114_v7 }
 0x23b   : > { %v4787_v12 = vpop.eup %4786  ;;  %v1500_v4 = vadd.f32 1e-05, %v1492_v8  ;;  %v1127_v57 = vmul.f32 %v5429_v34, %v1115_v9  ;;  %4449 = vmatpush3.bf16.msra.mxu1 %v4446_v14  ;;  %4112 = vmatprep.mubr.msk.f32.mxu1 %vm488_vm0, %v1137_v25 }
 0x23c   : > { %v1501_v31 = vadd.f32 1e-05, %v1493_v15  ;;  %v4789_v19 = vpop.eup %4788  ;;  %v1486_v21 = vpop.xlane.xlu1 %1485  ;;  %v1138_v48 = vadd.f32 %v5441_v24, %v1126_v6  ;;  %v1116_v30 = vmul.f32 %v4787_v12, %v5295_v13 }
 0x23d   : > { %4798 = vrsqrt.f32 %v1500_v4  ;;  %v1494_v47 = vmul.f32 0.03125, %v1486_v21  ;;  %v1139_v18 = vadd.f32 %v5441_v24, %v1127_v57  ;;  %v1511_v26 = vmul.f32 %v4789_v19, %v5298_v28 }
 0x23e   : > { %4800 = vrsqrt.f32 %v1501_v31  ;;  %4113 = vmatmul.mubr.msk.f32.gmra.mrb[16].mxu1 %vm488_vm0, %v1138_v48  ;;  %v1128_v16 = vmul.f32 %v5429_v34, %v1116_v30 }
 0x23f   : > { %v4791_v42 = vpop.eup %4790  ;;  %v1502_v10 = vadd.f32 1e-05, %v1494_v47  ;;  %4115 = vmatprep.mubr.msk.f32.mxu1 %vm488_vm0, %v1139_v18  ;;  %v1523_v27 = vmul.f32 %v1522_v35, %v1511_v26 }
 0x240   : > { %v4793_v13 = vpop.eup %4792  ;;  %v1512_v32 = vmul.f32 %v4791_v42, %v5313_v36  ;;  %v1140_v37 = vadd.f32 %v5441_v24, %v1128_v16 }
 0x241   : > { %4802 = vrsqrt.f32 %v1502_v10  ;;  %v1535_v56 = vadd.f32 %v1534_v22, %v1523_v27  ;;  %v1513_v33 = vmul.f32 %v4793_v13, %v5316_v17 }
 0x242   : > { %v1524_v28 = vmul.f32 %v1522_v35, %v1512_v32  ;;  %4116 = vmatmul.mubr.msk.f32.gmra.mrb[18].mxu1 %vm488_vm0, %v1140_v37 }
 0x243   : > { %v4795_v45 = vpop.eup %4794  ;;  %4146 = vmatprep.mubr.msk.f32.mxu1 %vm488_vm0, %v1535_v56  ;;  %v1525_v34 = vmul.f32 %v1522_v35, %v1513_v33 }
 0x244   : > { %v4797_v14 = vpop.eup %4796  ;;  %v1536_v46 = vadd.f32 %v1534_v22, %v1524_v28  ;;  %v1514_v39 = vmul.f32 %v4795_v45, %v5331_v0 }
 0x245   : > { %v1537_v40 = vadd.f32 %v1534_v22, %v1525_v34  ;;  %v1515_v36 = vmul.f32 %v4797_v14, %v5334_v1 }
 0x246   : > { %4147 = vmatmul.mubr.msk.f32.vlgmr.msra.gmra.mrb[20].mxu1 %vm488_vm0, %v1536_v46  ;;  %v1526_v24 = vmul.f32 %v1522_v35, %v1514_v39 }
 0x247   : > { %v4799_v50 = vpop.eup %4798  ;;  %4149 = vmatprep.mubr.msk.f32.mxu1 %vm488_vm0, %v1537_v40  ;;  %v1527_v17 = vmul.f32 %v1522_v35, %v1515_v36 }
 0x248   : > { %v4801_v53 = vpop.eup %4800  ;;  %v1538_v55 = vadd.f32 %v1534_v22, %v1526_v24  ;;  %v1516_v62 = vmul.f32 %v4799_v50, %v5343_v49 }
 0x249   : > { %v1539_v43 = vadd.f32 %v1534_v22, %v1527_v17  ;;  %v1517_v38 = vmul.f32 %v4801_v53, %v5346_v20  ;;  %v478_v20 = vld [vmem:[%s6189_s8] sm:$0x7] }
 0x24a   : > { %4150 = vmatmul.mubr.msk.f32.gmra.mrb[22].mxu1 %vm488_vm0, %v1538_v55  ;;  %v1528_v0 = vmul.f32 %v1522_v35, %v1516_v62  ;;  %v750_v8 = vrot.slane %v478_v20, %v5098_v44  ;;  %v1144_v10 = vrot.slane %v478_v20, %v5114_v60 }
 0x24b   : > { %v4803_v41 = vpop.eup %4802  ;;  %4152 = vmatprep.mubr.msk.f32.mxu1 %vm488_vm0, %v1539_v43  ;;  %v1529_v1 = vmul.f32 %v1522_v35, %v1517_v38 }
 0x24c   : > { %v1540_v29 = vadd.f32 %v1534_v22, %v1528_v0  ;;  %v1518_v3 = vmul.f32 %v4803_v41, %v5355_v54 }
 0x24d   : > { %v1541_v63 = vadd.f32 %v1534_v22, %v1529_v1  ;;  %v1546_v1 = vrot.slane %v478_v20, %v5151_v23 }
 0x24e   : > { %4153 = vmatmul.mubr.msk.f32.gmra.mrb[24].mxu1 %vm488_vm0, %v1540_v29  ;;  %v1530_v7 = vmul.f32 %v1522_v35, %v1518_v3 }
 0x24f   : > { %4155 = vmatprep.mubr.msk.f32.mxu1 %vm488_vm0, %v1541_v63 }
 0x250   : > { %v1542_v49 = vadd.f32 %v1534_v22, %v1530_v7 }
 0x252   : > { %4156 = vmatmul.mubr.msk.f32.gmra.mrb[26].mxu1 %vm488_vm0, %v1542_v49 }
 0x2f9   : > { %v4068_v15 = vpop.f32.mrb[4].mxu1 }
 0x2fa   : > { %v5508_v9 = vadd.f32 %v4068_v15, %v750_v8  ;;  %v841_v25 = vpop.f32.mrb[5].mxu1 }
 0x2fb   : > { %v5510_v54 = vadd.f32 %v841_v25, %v750_v8 }
 0x2fd   : > { %v4071_v6 = vpop.f32.mrb[6].mxu1  ;;  %v4474_v12 = vpack.c.bf16 %v5508_v9, %v5510_v54  ;;  %v5516_v35 = vpack.i.bf16 %v5508_v9, %v5510_v54 }
 0x2fe   : > { %v5518_v4 = vadd.f32 %v4071_v6, %v750_v8  ;;  %v851_v31 = vpop.f32.mrb[7].mxu1 }
 0x2ff   : > { %v5520_v57 = vadd.f32 %v851_v31, %v750_v8  ;;  %4475 = vmatprep.subr.bf16.mxu1 %v4474_v12 }
 0x300   : > { %4477 = vmatpush3.bf16.msra.mxu1 %v4474_v12 }
 0x301   : > { %v4074_v44 = vpop.f32.mrb[8].mxu1  ;;  %v4478_v19 = vpack.c.bf16 %v5518_v4, %v5520_v57  ;;  %v5526_v21 = vpack.i.bf16 %v5518_v4, %v5520_v57 }
 0x302   : > { %v5528_v48 = vadd.f32 %v4074_v44, %v750_v8  ;;  %v861_v30 = vpop.f32.mrb[9].mxu1 }
 0x303   : > { %v5530_v22 = vadd.f32 %v861_v30, %v750_v8  ;;  %4479 = vmatprep.subr.bf16.mxu1 %v4478_v19 }
 0x304   : > { %4481 = vmatpush3.bf16.msra.mxu1 %v4478_v19 }
 0x305   : > { %v4077_v47 = vpop.f32.mrb[10].mxu1  ;;  %v4482_v18 = vpack.c.bf16 %v5528_v48, %v5530_v22  ;;  %v5536_v26 = vpack.i.bf16 %v5528_v48, %v5530_v22 }
 0x306   : > { %v5538_v16 = vadd.f32 %v4077_v47, %v750_v8  ;;  %v871_v42 = vpop.f32.mrb[11].mxu1 }
 0x307   : > { %v5541_v27 = vadd.f32 %v871_v42, %v750_v8  ;;  %4483 = vmatprep.subr.bf16.mxu1 %v4482_v18 }
 0x308   : > { %4485 = vmatpush3.bf16.msra.mxu1 %v4482_v18 }
 0x309   : > { %v4108_v13 = vpop.f32.mrb[12].mxu1  ;;  %v4486_v32 = vpack.c.bf16 %v5538_v16, %v5541_v27  ;;  %v5547_v37 = vpack.i.bf16 %v5538_v16, %v5541_v27 }
 0x30a   : > { %v1241_v56 = vadd.f32 %v4108_v13, %v1144_v10  ;;  %v1235_v33 = vpop.f32.mrb[13].mxu1 }
 0x30b   : > { %v1236_v28 = vadd.f32 %v1235_v33, %v1144_v10  ;;  %4487 = vmatprep.subr.bf16.mxu1 %v4486_v32 }
 0x30c   : > { %v5550_v45 = vadd.f32 %v1241_v56, %v5508_v9  ;;  %4489 = vmatpush3.bf16.msra.mxu1 %v4486_v32 }
 0x30d   : > { %v1274_v60 = vadd.f32 %v1236_v28, %v5510_v54  ;;  %v4111_v34 = vpop.f32.mrb[14].mxu1 }
 0x30e   : > { %v1251_v14 = vadd.f32 %v4111_v34, %v1144_v10  ;;  %v1245_v46 = vpop.f32.mrb[15].mxu1 }
 0x30f   : > { %v5553_v39 = vmul.f32 0.35355338, %v1274_v60  ;;  %v1246_v40 = vadd.f32 %v1245_v46, %v1144_v10 }
 0x310   : > { %v1277_v36 = vadd.f32 %v1251_v14, %v5518_v4 }
 0x311   : > { %v1276_v24 = vadd.f32 %v1246_v40, %v5520_v57  ;;  %v4114_v50 = vpop.f32.mrb[16].mxu1  ;;  %4174 = vmatprep.mubr.msk.f32.mxu0 %vm1692_vm1, %v5553_v39 }
 0x312   : > { %v1261_v17 = vadd.f32 %v4114_v50, %v1144_v10  ;;  %v1255_v53 = vpop.f32.mrb[17].mxu1  ;;  %v5611_v50 = vmul.f32 0.35355338, %v1277_v36 }
 0x313   : > { %v1256_v55 = vadd.f32 %v1255_v53, %v1144_v10 }
 0x314   : > { %v1279_v62 = vadd.f32 %v1261_v17, %v5528_v48 }
 0x315   : > { %v1278_v43 = vadd.f32 %v1256_v55, %v5530_v22  ;;  %v4117_v38 = vpop.f32.mrb[18].mxu1 }
 0x316   : > { %v1271_v0 = vadd.f32 %v4117_v38, %v1144_v10  ;;  %v1265_v41 = vpop.f32.mrb[19].mxu1 }
 0x317   : > { %v1266_v29 = vadd.f32 %v1265_v41, %v1144_v10  ;;  %v5613_v17 = vmul.f32 0.35355338, %v1278_v43 }
 0x318   : > { %v1281_v3 = vadd.f32 %v1271_v0, %v5538_v16 }
 0x319   : > { %v1280_v63 = vadd.f32 %v1266_v29, %v5541_v27  ;;  %v4148_v7 = vpop.f32.mrb[20].mxu1 }
 0x31a   : > { %v1643_v49 = vadd.f32 %v4148_v7, %v1546_v1  ;;  %v1637_v8 = vpop.f32.mrb[21].mxu1  ;;  %v5627_v36 = vmul.f32 0.35355338, %v1281_v3 }
 0x31b   : > { %v1638_v15 = vadd.f32 %v1637_v8, %v1546_v1 }
 0x31c   : > { %v1677_v25 = vadd.f32 %v1643_v49, %v5508_v9 }
 0x31d   : > { %v1676_v6 = vadd.f32 %v1638_v15, %v5510_v54  ;;  %v4151_v12 = vpop.f32.mrb[22].mxu1 }
 0x31e   : > { %v1653_v31 = vadd.f32 %v4151_v12, %v1546_v1  ;;  %v1647_v44 = vpop.f32.mrb[23].mxu1 }
 0x31f   : > { %v1648_v20 = vadd.f32 %v1647_v44, %v1546_v1  ;;  %v4450_v19 = vpack.c.bf16 %v1677_v25, %v1676_v6  ;;  %v5572_v30 = vpack.i.bf16 %v1677_v25, %v1676_v6 }
 0x320   : > { %v1679_v47 = vadd.f32 %v1653_v31, %v5518_v4 }
 0x321   : > { %v1678_v18 = vadd.f32 %v1648_v20, %v5520_v57  ;;  %v4154_v9 = vpop.f32.mrb[24].mxu1  ;;  %4452 = vmatprep.subr.msk.bf16.mxu0 %vm5568_vm2, %v4450_v19 }
 0x322   : > { %v1663_v54 = vadd.f32 %v4154_v9, %v1546_v1  ;;  %v1657_v42 = vpop.f32.mrb[25].mxu1  ;;  %4455 = vmatpush3.bf16.xpose.msk.msra.mxu0 %vm5568_vm2, %v4450_v19 }
 0x323   : > { %v1658_v10 = vadd.f32 %v1657_v42, %v1546_v1  ;;  %v4456_v13 = vpack.c.bf16 %v1679_v47, %v1678_v18  ;;  %v5580_v32 = vpack.i.bf16 %v1679_v47, %v1678_v18 }
 0x324   : > { %v1681_v56 = vadd.f32 %v1663_v54, %v5528_v48 }
 0x325   : > { %v1680_v33 = vadd.f32 %v1658_v10, %v5530_v22  ;;  %v4157_v4 = vpop.f32.mrb[26].mxu1  ;;  %4458 = vmatprep.subr.msk.bf16.mxu0 %vm5568_vm2, %v4456_v13 }
 0x326   : > { %v1673_v57 = vadd.f32 %v4157_v4, %v1546_v1  ;;  %v1667_v28 = vpop.f32.mrb[27].mxu1 }
 0x327   : > { %v1668_v60 = vadd.f32 %v1667_v28, %v1546_v1  ;;  %v4462_v34 = vpack.c.bf16 %v1681_v56, %v1680_v33  ;;  %v5586_v14 = vpack.i.bf16 %v1681_v56, %v1680_v33 }
 0x328   : > { %v1683_v46 = vadd.f32 %v1673_v57, %v5538_v16  ;;  %v5603_v16 = vmul.f32 0.35355338, %v5550_v45  ;;  %v5619_v45 = vmul.f32 0.35355338, %v1279_v62 }
 0x329   : > { %v1682_v40 = vadd.f32 %v1668_v60, %v5541_v27  ;;  %v5605_v27 = vmul.f32 0.35355338, %v1276_v24  ;;  %v5621_v24 = vmul.f32 0.35355338, %v1280_v63 }
 0x32a   : > { %4461 = vmatpush3.bf16.xpose.msk.msra.mxu0 %vm5568_vm2, %v4456_v13 }
 0x32b   : > { %4464 = vmatprep.subr.msk.bf16.mxu0 %vm5568_vm2, %v4462_v34  ;;  %v4468_v48 = vpack.c.bf16 %v1683_v46, %v1682_v40  ;;  %v5594_v22 = vpack.i.bf16 %v1683_v46, %v1682_v40 }
 0x332   : > { %4467 = vmatpush3.bf16.xpose.msk.msra.mxu0 %vm5568_vm2, %v4462_v34 }
 0x333   : > { %4470 = vmatprep.subr.msk.bf16.mxu0 %vm5568_vm2, %v4468_v48 }
 0x33a   : > { %4473 = vmatpush3.bf16.xpose.msk.msra.mxu0 %vm5568_vm2, %v4468_v48 }
 0x341   : > { %4175 = vmatmul.mubr.msk.f32.vlgmr.msra.gmra.mrb[20].mxu0 %vm1692_vm1, %v5603_v16 }
 0x342   : > { %4177 = vmatprep.mubr.msk.f32.mxu0 %vm1692_vm1, %v5605_v27 }
 0x345   : > { %4178 = vmatmul.mubr.msk.f32.gmra.mrb[22].mxu0 %vm1692_vm1, %v5611_v50 }
 0x346   : > { %4180 = vmatprep.mubr.msk.f32.mxu0 %vm1692_vm1, %v5613_v17 }
 0x349   : > { %4181 = vmatmul.mubr.msk.f32.gmra.mrb[24].mxu0 %vm1692_vm1, %v5619_v45 }
 0x34a   : > { %4183 = vmatprep.mubr.msk.f32.mxu0 %vm1692_vm1, %v5621_v24 }
 0x34d   : > { %4184 = vmatmul.mubr.msk.f32.gmra.mrb[26].mxu0 %vm1692_vm1, %v5627_v36 }
 0x414   : > { %v4176_v53 = vpop.f32.mrb[20].mxu0 }
 0x415   : > { %v1807_v55 = vpop.f32.mrb[21].mxu0  ;;  %v1850_v43 = vsel %vm1846_vm3, %v4176_v53, -inf }
 0x416   : > { %1851 = vmax.xlane.f32.xlu1 %v1850_v43  ;;  %v1847_v62 = vsel %vm1846_vm3, %v1807_v55, -inf }
 0x417   : > { %1848 = vmax.xlane.f32.xlu0 %v1847_v62 }
 0x418   : > { %v4179_v38 = vpop.f32.mrb[22].mxu0 }
 0x419   : > { %v1817_v0 = vpop.f32.mrb[23].mxu0  ;;  %v1856_v41 = vsel %vm1846_vm3, %v4179_v38, -inf }
 0x41a   : > { %1857 = vmax.xlane.f32.xlu1 %v1856_v41  ;;  %v1853_v1 = vsel %vm1846_vm3, %v1817_v0, -inf }
 0x41b   : > { %1854 = vmax.xlane.f32.xlu0 %v1853_v1 }
 0x41c   : > { %v4182_v29 = vpop.f32.mrb[24].mxu0 }
 0x41d   : > { %v1827_v3 = vpop.f32.mrb[25].mxu0  ;;  %v1862_v63 = vsel %vm1846_vm3, %v4182_v29, -inf }
 0x41e   : > { %1863 = vmax.xlane.f32.xlu1 %v1862_v63  ;;  %v1859_v7 = vsel %vm1846_vm3, %v1827_v3, -inf }
 0x41f   : > { %1860 = vmax.xlane.f32.xlu0 %v1859_v7 }
 0x420   : > { %v4185_v49 = vpop.f32.mrb[26].mxu0 }
 0x421   : > { %v1837_v8 = vpop.f32.mrb[27].mxu0  ;;  %v1868_v15 = vsel %vm1846_vm3, %v4185_v49, -inf }
 0x422   : > { %1869 = vmax.xlane.f32.xlu1 %v1868_v15  ;;  %v1865_v25 = vsel %vm1846_vm3, %v1837_v8, -inf }
 0x423   : > { %1866 = vmax.xlane.f32.xlu0 %v1865_v25 }
 0x4a3   : > { %v1852_v6 = vpop.xlane.xlu1 %1851 }
 0x4a4   : > { %v1872_v12 = vsub.f32 %v4176_v53, %v1852_v6  ;;  %v1849_v31 = vpop.xlane.xlu0 %1848 }
 0x4a5   : > { %v1871_v44 = vsub.f32 %v1807_v55, %v1849_v31 }
 0x4a6   : > { %v1881_v20 = vmul.f32 1.442695, %v1872_v12 }
 0x4a7   : > { %v1879_v19 = vmul.f32 1.442695, %v1871_v44  ;;  %v1858_v42 = vpop.xlane.xlu1 %1857 }
 0x4a8   : > { %4804 = vpow2.f32 %v1881_v20  ;;  %v1855_v10 = vpop.xlane.xlu0 %1854  ;;  %v1874_v13 = vsub.f32 %v4179_v38, %v1858_v42 }
 0x4a9   : > { %4806 = vpow2.f32 %v1879_v19  ;;  %v1873_v56 = vsub.f32 %v1817_v0, %v1855_v10 }
 0x4aa   : > { %v1885_v57 = vmul.f32 1.442695, %v1874_v13 }
 0x4ab   : > { %v1864_v33 = vpop.xlane.xlu1 %1863  ;;  %v1883_v60 = vmul.f32 1.442695, %v1873_v56 }
 0x4ac   : > { %v1861_v4 = vpop.xlane.xlu0 %1860  ;;  %v1876_v28 = vsub.f32 %v4182_v29, %v1864_v33  ;;  %4808 = vpow2.f32 %v1885_v57 }
 0x4ad   : > { %v1875_v34 = vsub.f32 %v1827_v3, %v1861_v4  ;;  %4810 = vpow2.f32 %v1883_v60 }
 0x4ae   : > { %v1889_v46 = vmul.f32 1.442695, %v1876_v28 }
 0x4af   : > { %v1887_v40 = vmul.f32 1.442695, %v1875_v34  ;;  %v1870_v1 = vpop.xlane.xlu1 %1869 }
 0x4b0   : > { %4812 = vpow2.f32 %v1889_v46  ;;  %v1878_v29 = vsub.f32 %v4185_v49, %v1870_v1  ;;  %v1867_v3 = vpop.xlane.xlu0 %1866 }
 0x4b1   : > { %4814 = vpow2.f32 %v1887_v40  ;;  %v1877_v7 = vsub.f32 %v1837_v8, %v1867_v3 }
 0x4b2   : > { %v5639_v47 = vpop.eup %4804  ;;  %v1893_v63 = vmul.f32 1.442695, %v1878_v29 }
 0x4b3   : > { %v5641_v18 = vpop.eup %4806  ;;  %v1898_v9 = vsel %vm1846_vm3, %v5639_v47, 0.0  ;;  %v1891_v15 = vmul.f32 1.442695, %v1877_v7 }
 0x4b4   : > { %1899 = vadd.xlane.f32.xlu1 %v1898_v9  ;;  %v1895_v54 = vsel %vm1846_vm3, %v5641_v18, 0.0  ;;  %4816 = vpow2.f32 %v1893_v63 }
 0x4b5   : > { %1896 = vadd.xlane.f32.xlu0 %v1895_v54  ;;  %4818 = vpow2.f32 %v1891_v15 }
 0x4b6   : > { %v5651_v48 = vpop.eup %4808 }
 0x4b7   : > { %v5653_v53 = vpop.eup %4810  ;;  %v1904_v55 = vsel %vm1846_vm3, %v5651_v48, 0.0 }
 0x4b8   : > { %v1901_v62 = vsel %vm1846_vm3, %v5653_v53, 0.0 }
 0x4ba   : > { %v5657_v43 = vpop.eup %4812 }
 0x4bb   : > { %v5661_v38 = vpop.eup %4814  ;;  %v1910_v0 = vsel %vm1846_vm3, %v5657_v43, 0.0 }
 0x4bc   : > { %v1907_v41 = vsel %vm1846_vm3, %v5661_v38, 0.0 }
 0x4be   : > { %v5679_v25 = vpop.eup %4816 }
 0x4bf   : > { %v1916_v49 = vsel %vm1846_vm3, %v5679_v25, 0.0  ;;  %v5683_v6 = vpop.eup %4818 }
 0x4c0   : > { %v1913_v8 = vsel %vm1846_vm3, %v5683_v6, 0.0 }
 0x4c5   : > { %4642 = vrot.lane.b32.xlu1 %v5580_v32, %s4940_s15 }
 0x4cb   : > { %4637 = vrot.lane.b32.xlu0 %v5572_v30, %s4940_s15 }
 0x4e9   : > { %1905 = vadd.xlane.f32.xlu1 %v1904_v55 }
 0x4ea   : > { %1902 = vadd.xlane.f32.xlu0 %v1901_v62 }
 0x4ed   : > { %1911 = vadd.xlane.f32.xlu1 %v1910_v0 }
 0x4ee   : > { %1908 = vadd.xlane.f32.xlu0 %v1907_v41 }
 0x4fe   : > { %4652 = vrot.lane.b32.xlu1 %v5594_v22, %s4940_s15 }
 0x504   : > { %4647 = vrot.lane.b32.xlu0 %v5586_v14, %s4940_s15 }
 0x508   : > { %2064 = vrot.lane.b32.xlu0 %v5553_v39, %s4940_s15 }
 0x50c   : > { %2068 = vrot.lane.b32.xlu0 %v5605_v27, %s4940_s15 }
 0x510   : > { %2072 = vrot.lane.b32.xlu0 %v5613_v17, %s4940_s15 }
 0x514   : > { %2076 = vrot.lane.b32.xlu0 %v5621_v24, %s4940_s15 }
 0x522   : > { %1917 = vadd.xlane.f32.xlu1 %v1916_v49 }
 0x526   : > { %1914 = vadd.xlane.f32.xlu1 %v1913_v8 }
 0x537   : > { %2066 = vrot.lane.b32.xlu1 %v5603_v16, %s4940_s15 }
 0x53b   : > { %2070 = vrot.lane.b32.xlu1 %v5611_v50, %s4940_s15 }
 0x53f   : > { %2074 = vrot.lane.b32.xlu1 %v5619_v45, %s4940_s15 }
 0x541   : > { %v1900_v12 = vpop.xlane.xlu1 %1899 }
 0x542   : > { %4820 = vrcp.f32 %v1900_v12  ;;  %v1897_v31 = vpop.xlane.xlu0 %1896 }
 0x543   : > { %4822 = vrcp.f32 %v1897_v31  ;;  %2078 = vrot.lane.b32.xlu1 %v5627_v36, %s4940_s15 }
 0x545   : > { %v4643_v54 = vpop.permute.xlu1 %4642 }
 0x546   : > { %v4638_v44 = vpop.permute.xlu0 %4637  ;;  %v4645_v13 = vunpack.i.h.bf16 %v4643_v54  ;;  %v4644_v56 = vunpack.i.l.bf16 %v4643_v54 }
 0x547   : > { %v4640_v20 = vunpack.i.h.bf16 %v4638_v44  ;;  %v4639_v19 = vunpack.i.l.bf16 %v4638_v44 }
 0x548   : > { %v4496_v57 = vpack.c.bf16 %v4645_v13, %v4644_v56 }
 0x549   : > { %v4490_v9 = vpack.c.bf16 %v4640_v20, %v4639_v19 }
 0x54b   : > { %4492 = vmatprep.subr.msk.bf16.mxu1 %vm5568_vm2, %v4490_v9 }
 0x54c   : > { %v4821_v42 = vpop.eup %4820 }
 0x54d   : > { %v4823_v10 = vpop.eup %4822  ;;  %v1928_v4 = vmul.f32 %v4821_v42, %v5639_v47 }
 0x54e   : > { %v1927_v33 = vmul.f32 %v4823_v10, %v5641_v18 }
 0x550   : > { %4202 = vmatprep.mubr.msk.f32.mxu1 %vm1846_vm3, %v1927_v33 }
 0x551   : > { %4203 = vmatmul.mubr.msk.f32.vlgmr.msra.gmra.mrb[28].mxu1 %vm1846_vm3, %v1928_v4 }
 0x552   : > { %4495 = vmatpush3.bf16.xpose.msk.msra.mxu1 %vm5568_vm2, %v4490_v9 }
 0x553   : > { %4498 = vmatprep.subr.msk.bf16.mxu1 %vm5568_vm2, %v4496_v57 }
 0x55a   : > { %4501 = vmatpush3.bf16.xpose.msk.msra.mxu1 %vm5568_vm2, %v4496_v57 }
 0x576   : > { %v1906_v28 = vpop.xlane.xlu1 %1905 }
 0x577   : > { %4824 = vrcp.f32 %v1906_v28  ;;  %v1903_v60 = vpop.xlane.xlu0 %1902 }
 0x578   : > { %4826 = vrcp.f32 %v1903_v60 }
 0x57a   : > { %v1912_v18 = vpop.xlane.xlu1 %1911 }
 0x57b   : > { %4828 = vrcp.f32 %v1912_v18  ;;  %v1909_v47 = vpop.xlane.xlu0 %1908 }
 0x57c   : > { %4830 = vrcp.f32 %v1909_v47 }
 0x57e   : > { %v4653_v34 = vpop.permute.xlu1 %4652 }
 0x57f   : > { %v4648_v46 = vpop.permute.xlu0 %4647  ;;  %v4655_v40 = vunpack.i.h.bf16 %v4653_v34  ;;  %v4654_v55 = vunpack.i.l.bf16 %v4653_v34 }
 0x580   : > { %v4650_v62 = vunpack.i.h.bf16 %v4648_v46  ;;  %v4649_v0 = vunpack.i.l.bf16 %v4648_v46 }
 0x581   : > { %v4825_v41 = vpop.eup %4824  ;;  %v4508_v63 = vpack.c.bf16 %v4655_v40, %v4654_v55 }
 0x582   : > { %v4827_v1 = vpop.eup %4826  ;;  %v4502_v29 = vpack.c.bf16 %v4650_v62, %v4649_v0  ;;  %v1930_v7 = vmul.f32 %v4825_v41, %v5651_v48 }
 0x583   : > { %v1929_v3 = vmul.f32 %v4827_v1, %v5653_v53  ;;  %v2065_v31 = vpop.permute.xlu0 %2064 }
 0x584   : > { %4504 = vmatprep.subr.msk.bf16.mxu1 %vm5568_vm2, %v4502_v29 }
 0x585   : > { %v4829_v15 = vpop.eup %4828  ;;  %4205 = vmatprep.mubr.msk.f32.mxu1 %vm1846_vm3, %v1929_v3  ;;  %4507 = vmatpush3.bf16.xpose.msk.msra.mxu1 %vm5568_vm2, %v4502_v29 }
 0x586   : > { %v4831_v49 = vpop.eup %4830  ;;  %4206 = vmatmul.mubr.msk.f32.gmra.mrb[30].mxu1 %vm1846_vm3, %v1930_v7  ;;  %4510 = vmatprep.subr.msk.bf16.mxu1 %vm5568_vm2, %v4508_v63  ;;  %v1932_v8 = vmul.f32 %v4829_v15, %v5657_v43 }
 0x587   : > { %v1931_v53 = vmul.f32 %v4831_v49, %v5661_v38  ;;  %v2069_v43 = vpop.permute.xlu0 %2068 }
 0x589   : > { %4208 = vmatprep.mubr.msk.f32.mxu1 %vm1846_vm3, %v1931_v53 }
 0x58a   : > { %4209 = vmatmul.mubr.msk.f32.gmra.mrb[32].mxu1 %vm1846_vm3, %v1932_v8 }
 0x58b   : > { %v2073_v42 = vpop.permute.xlu0 %2072 }
 0x58d   : > { %4513 = vmatpush3.bf16.xpose.msk.msra.mxu1 %vm5568_vm2, %v4508_v63 }
 0x5af   : > { %v1918_v48 = vpop.xlane.xlu1 %1917 }
 0x5b0   : > { %4832 = vrcp.f32 %v1918_v48 }
 0x5b3   : > { %v1915_v12 = vpop.xlane.xlu1 %1914 }
 0x5b4   : > { %4834 = vrcp.f32 %v1915_v12 }
 0x5b7   : > { %v2067_v19 = vpop.permute.xlu1 %2066 }
 0x5ba   : > { %v4833_v44 = vpop.eup %4832 }
 0x5bb   : > { %v1934_v38 = vmul.f32 %v4833_v44, %v5679_v25  ;;  %v2071_v54 = vpop.permute.xlu1 %2070 }
 0x5be   : > { %v4835_v20 = vpop.eup %4834 }
 0x5bf   : > { %v1933_v9 = vmul.f32 %v4835_v20, %v5683_v6  ;;  %v2075_v10 = vpop.permute.xlu1 %2074  ;;  %v2077_v6 = vpop.permute.xlu0 %2076 }
 0x5c1   : > { %4211 = vmatprep.mubr.msk.f32.mxu1 %vm1846_vm3, %v1933_v9 }
 0x5c2   : > { %4212 = vmatmul.mubr.msk.f32.gmra.mrb[34].mxu1 %vm1846_vm3, %v1934_v38 }
 0x5c3   : > { %4230 = vmatprep.mubr.msk.f32.mxu1 %vm1692_vm1, %v2065_v31  ;;  %v2079_v25 = vpop.permute.xlu1 %2078 }
 0x5c6   : > { %4231 = vmatmul.mubr.msk.f32.vlgmr.msra.gmra.mrb[36].mxu1 %vm1692_vm1, %v2067_v19 }
 0x5c7   : > { %4233 = vmatprep.mubr.msk.f32.mxu1 %vm1692_vm1, %v2069_v43 }
 0x5ca   : > { %4234 = vmatmul.mubr.msk.f32.gmra.mrb[38].mxu1 %vm1692_vm1, %v2071_v54 }
 0x5cb   : > { %4236 = vmatprep.mubr.msk.f32.mxu1 %vm1692_vm1, %v2073_v42 }
 0x5ce   : > { %4237 = vmatmul.mubr.msk.f32.gmra.mrb[40].mxu1 %vm1692_vm1, %v2075_v10 }
 0x5cf   : > { %4239 = vmatprep.mubr.msk.f32.mxu1 %vm1692_vm1, %v2077_v6 }
 0x5d2   : > { %4240 = vmatmul.mubr.msk.f32.gmra.mrb[42].mxu1 %vm1692_vm1, %v2079_v25 }
 0x624   : > { %v5735_v13 = vpop.f32.mrb[28].mxu1 }
 0x625   : > { %v5737_v56 = vpop.f32.mrb[29].mxu1 }
 0x659   : > { %v5739_v33 = vpop.f32.mrb[30].mxu1 }
 0x65a   : > { %v5741_v4 = vpop.f32.mrb[31].mxu1 }
 0x65d   : > { %v5743_v57 = vpop.f32.mrb[32].mxu1 }
 0x65e   : > { %v5745_v28 = vpop.f32.mrb[33].mxu1 }
 0x695   : > { %v5747_v60 = vpop.f32.mrb[34].mxu1 }
 0x696   : > { %v5749_v18 = vpop.f32.mrb[35].mxu1 }
 0x699   : > { %v4232_v47 = vpop.f32.mrb[36].mxu1 }
 0x69a   : > { %v2194_v34 = vpop.f32.mrb[37].mxu1  ;;  %v2236_v46 = vsel %vm1846_vm3, %v4232_v47, -inf }
 0x69b   : > { %2237 = vmax.xlane.f32.xlu1 %v2236_v46  ;;  %v2233_v40 = vsel %vm1846_vm3, %v2194_v34, -inf }
 0x69c   : > { %2234 = vmax.xlane.f32.xlu0 %v2233_v40 }
 0x69d   : > { %v4235_v55 = vpop.f32.mrb[38].mxu1 }
 0x69e   : > { %v2204_v62 = vpop.f32.mrb[39].mxu1  ;;  %v2242_v0 = vsel %vm1846_vm3, %v4235_v55, -inf }
 0x69f   : > { %v2239_v3 = vsel %vm1846_vm3, %v2204_v62, -inf }
 0x6a0   : > { %2243 = vmax.xlane.f32.xlu0 %v2242_v0 }
 0x6a1   : > { %v4238_v41 = vpop.f32.mrb[40].mxu1 }
 0x6a2   : > { %v2214_v1 = vpop.f32.mrb[41].mxu1  ;;  %v2248_v29 = vsel %vm1846_vm3, %v4238_v41, -inf }
 0x6a3   : > { %2249 = vmax.xlane.f32.xlu1 %v2248_v29  ;;  %v2245_v49 = vsel %vm1846_vm3, %v2214_v1, -inf }
 0x6a4   : > { %2240 = vmax.xlane.f32.xlu0 %v2239_v3 }
 0x6a5   : > { %v5756_v63 = vpop.f32.mrb[42].mxu1 }
 0x6a6   : > { %v5758_v7 = vpop.f32.mrb[43].mxu1  ;;  %v2254_v15 = vsel %vm1846_vm3, %v5756_v63, -inf }
 0x6a7   : > { %2255 = vmax.xlane.f32.xlu1 %v2254_v15  ;;  %v2251_v53 = vsel %vm1846_vm3, %v5758_v7, -inf }
 0x6a8   : > { %2246 = vmax.xlane.f32.xlu0 %v2245_v49 }
 0x6ac   : > { %2252 = vmax.xlane.f32.xlu0 %v2251_v53 }
 0x6b8   : > { %4662 = vrot.lane.b32.xlu1 %v5526_v21, %s4940_s15 }
 0x6bc   : > { %4667 = vrot.lane.b32.xlu1 %v5536_v26, %s4940_s15 }
 0x6c0   : > { %4672 = vrot.lane.b32.xlu1 %v5547_v37, %s4940_s15 }
 0x6c2   : > { %4657 = vrot.lane.b32.xlu0 %v5516_v35, %s4940_s15 }
 0x6c4   : > { %4682 = vrot.lane.b32.xlu1 %v5580_v32, %s4941_s16 }
 0x6c6   : > { %4677 = vrot.lane.b32.xlu0 %v5572_v30, %s4941_s16 }
 0x728   : > { %v2238_v8 = vpop.xlane.xlu1 %2237 }
 0x729   : > { %v2258_v48 = vsub.f32 %v4232_v47, %v2238_v8  ;;  %v2235_v12 = vpop.xlane.xlu0 %2234 }
 0x72a   : > { %v2257_v31 = vsub.f32 %v2194_v34, %v2235_v12 }
 0x72b   : > { %v2267_v44 = vmul.f32 1.442695, %v2258_v48 }
 0x72c   : > { %v2265_v20 = vmul.f32 1.442695, %v2257_v31 }
 0x72d   : > { %4836 = vpow2.f32 %v2267_v44  ;;  %v2244_v19 = vpop.xlane.xlu0 %2243 }
 0x72e   : > { %4838 = vpow2.f32 %v2265_v20  ;;  %v2260_v9 = vsub.f32 %v4235_v55, %v2244_v19 }
 0x730   : > { %v2271_v38 = vmul.f32 1.442695, %v2260_v9  ;;  %v2250_v43 = vpop.xlane.xlu1 %2249 }
 0x731   : > { %v2262_v54 = vsub.f32 %v4238_v41, %v2250_v43  ;;  %v2241_v42 = vpop.xlane.xlu0 %2240 }
 0x732   : > { %4840 = vpow2.f32 %v2271_v38  ;;  %v2259_v10 = vsub.f32 %v2204_v62, %v2241_v42 }
 0x733   : > { %v2275_v6 = vmul.f32 1.442695, %v2262_v54 }
 0x734   : > { %v2269_v25 = vmul.f32 1.442695, %v2259_v10  ;;  %v2256_v46 = vpop.xlane.xlu1 %2255 }
 0x735   : > { %v2247_v40 = vpop.xlane.xlu0 %2246 }
 0x736   : > { %4842 = vpow2.f32 %v2269_v25  ;;  %v2261_v47 = vsub.f32 %v2214_v1, %v2247_v40 }
 0x737   : > { %v5777_v0 = vpop.eup %4836  ;;  %4844 = vpow2.f32 %v2275_v6 }
 0x738   : > { %v5779_v34 = vpop.eup %4838  ;;  %v2273_v29 = vmul.f32 1.442695, %v2261_v47  ;;  %v4663_v3 = vpop.permute.xlu1 %4662  ;;  %v2284_v55 = vsel %vm1846_vm3, %v5777_v0, 0.0 }
 0x739   : > { %2285 = vadd.xlane.f32.xlu1 %v2284_v55  ;;  %v2253_v41 = vpop.xlane.xlu0 %2252  ;;  %v2281_v62 = vsel %vm1846_vm3, %v5779_v34, 0.0  ;;  %v4665_v8 = vunpack.i.h.bf16 %v4663_v3  ;;  %v4664_v48 = vunpack.i.l.bf16 %v4663_v3 }
 0x73a   : > { %2282 = vadd.xlane.f32.xlu0 %v2281_v62  ;;  %4846 = vpow2.f32 %v2273_v29 }
 0x73b   : > { %v4518_v54 = vpack.c.bf16 %v4665_v8, %v4664_v48  ;;  %v2263_v48 = vsub.f32 %v5758_v7, %v2253_v41 }
 0x73c   : > { %v5785_v15 = vpop.eup %4840  ;;  %v4668_v1 = vpop.permute.xlu1 %4667 }
 0x73d   : > { %v4658_v49 = vpop.permute.xlu0 %4657  ;;  %v2290_v53 = vsel %vm1846_vm3, %v5785_v15, 0.0  ;;  %v4670_v38 = vunpack.i.h.bf16 %v4668_v1  ;;  %v4669_v43 = vunpack.i.l.bf16 %v4668_v1 }
 0x73e   : > { %v4660_v12 = vunpack.i.h.bf16 %v4658_v49  ;;  %v4659_v31 = vunpack.i.l.bf16 %v4658_v49  ;;  %2291 = vadd.xlane.f32.xlu1 %v2290_v53  ;;  %v2264_v53 = vsub.f32 %v5756_v63, %v2256_v46 }
 0x73f   : > { %v4522_v47 = vpack.c.bf16 %v4670_v38, %v4669_v43 }
 0x740   : > { %v5789_v44 = vpop.eup %4842  ;;  %v4514_v20 = vpack.c.bf16 %v4660_v12, %v4659_v31  ;;  %v4673_v42 = vpop.permute.xlu1 %4672  ;;  %v2279_v8 = vmul.f32 1.442695, %v2264_v53  ;;  %v2277_v12 = vmul.f32 1.442695, %v2263_v48 }
 0x741   : > { %v2287_v19 = vsel %vm1846_vm3, %v5789_v44, 0.0  ;;  %v5793_v9 = vpop.eup %4844  ;;  %v4675_v25 = vunpack.i.h.bf16 %v4673_v42  ;;  %v4674_v40 = vunpack.i.l.bf16 %v4673_v42  ;;  %v4678_v29 = vpop.permute.xlu0 %4677 }
 0x742   : > { %2288 = vadd.xlane.f32.xlu0 %v2287_v19  ;;  %4515 = vmatprep.subr.bf16.mxu0 %v4514_v20  ;;  %v2296_v10 = vsel %vm1846_vm3, %v5793_v9, 0.0  ;;  %v4680_v62 = vunpack.i.h.bf16 %v4678_v29  ;;  %v4679_v1 = vunpack.i.l.bf16 %v4678_v29  ;;  %4848 = vpow2.f32 %v2279_v8 }
 0x743   : > { %4517 = vmatpush3.bf16.msra.mxu0 %v4514_v20  ;;  %v4526_v55 = vpack.c.bf16 %v4675_v25, %v4674_v40  ;;  %4850 = vpow2.f32 %v2277_v12 }
 0x744   : > { %4519 = vmatprep.subr.bf16.mxu0 %v4518_v54  ;;  %v5797_v6 = vpop.eup %4846  ;;  %v4530_v49 = vpack.c.bf16 %v4680_v62, %v4679_v1  ;;  %v4683_v41 = vpop.permute.xlu1 %4682 }
 0x745   : > { %v2293_v3 = vsel %vm1846_vm3, %v5797_v6, 0.0  ;;  %v4684_v25 = vunpack.i.l.bf16 %v4683_v41 }
 0x746   : > { %2297 = vadd.xlane.f32.xlu0 %v2296_v10  ;;  %v4685_v10 = vunpack.i.h.bf16 %v4683_v41 }
 0x747   : > { %4521 = vmatpush3.bf16.msra.mxu0 %v4518_v54 }
 0x748   : > { %4523 = vmatprep.subr.bf16.mxu0 %v4522_v47 }
 0x74a   : > { %2294 = vadd.xlane.f32.xlu0 %v2293_v3  ;;  %v4536_v3 = vpack.c.bf16 %v4685_v10, %v4684_v25 }
 0x74b   : > { %4525 = vmatpush3.bf16.msra.mxu0 %v4522_v47 }
 0x74c   : > { %4527 = vmatprep.subr.bf16.mxu0 %v4526_v55  ;;  %v5815_v31 = vpop.eup %4848 }
 0x74d   : > { %v2302_v63 = vsel %vm1846_vm3, %v5815_v31, 0.0  ;;  %v5821_v7 = vpop.eup %4850 }
 0x74e   : > { %v2299_v46 = vsel %vm1846_vm3, %v5821_v7, 0.0 }
 0x74f   : > { %4692 = vrot.lane.b32.xlu1 %v5594_v22, %s4941_s16  ;;  %4529 = vmatpush3.bf16.msra.mxu0 %v4526_v55 }
 0x750   : > { %4532 = vmatprep.subr.msk.bf16.mxu0 %vm5568_vm2, %v4530_v49 }
 0x760   : > { %4687 = vrot.lane.b32.xlu0 %v5586_v14, %s4941_s16 }
 0x764   : > { %2482 = vrot.lane.b32.xlu0 %v5553_v39, %s4941_s16 }
 0x768   : > { %2486 = vrot.lane.b32.xlu0 %v5605_v27, %s4941_s16 }
 0x76c   : > { %2490 = vrot.lane.b32.xlu0 %v5613_v17, %s4941_s16 }
 0x770   : > { %2494 = vrot.lane.b32.xlu0 %v5621_v24, %s4941_s16 }
 0x773   : > { %2303 = vadd.xlane.f32.xlu1 %v2302_v63 }
 0x777   : > { %2300 = vadd.xlane.f32.xlu1 %v2299_v46 }
 0x788   : > { %2484 = vrot.lane.b32.xlu1 %v5603_v16, %s4941_s16 }
 0x78c   : > { %2488 = vrot.lane.b32.xlu1 %v5611_v50, %s4941_s16 }
 0x790   : > { %2492 = vrot.lane.b32.xlu1 %v5619_v45, %s4941_s16 }
 0x794   : > { %2496 = vrot.lane.b32.xlu1 %v5627_v36, %s4941_s16 }
 0x7c6   : > { %v2286_v20 = vpop.xlane.xlu1 %2285 }
 0x7c7   : > { %4852 = vrcp.f32 %v2286_v20  ;;  %v2283_v19 = vpop.xlane.xlu0 %2282 }
 0x7c8   : > { %4854 = vrcp.f32 %v2283_v19 }
 0x7cb   : > { %v2292_v38 = vpop.xlane.xlu1 %2291 }
 0x7cc   : > { %4856 = vrcp.f32 %v2292_v38 }
 0x7cf   : > { %v2289_v43 = vpop.xlane.xlu0 %2288 }
 0x7d0   : > { %4858 = vrcp.f32 %v2289_v43 }
 0x7d1   : > { %v4853_v54 = vpop.eup %4852 }
 0x7d2   : > { %v4855_v42 = vpop.eup %4854  ;;  %v2314_v29 = vmul.f32 %v4853_v54, %v5777_v0 }
 0x7d3   : > { %v2298_v40 = vpop.xlane.xlu0 %2297  ;;  %v2313_v47 = vmul.f32 %v4855_v42, %v5779_v34 }
 0x7d4   : > { %4860 = vrcp.f32 %v2298_v40 }
 0x7d5   : > { %4258 = vmatprep.mubr.msk.f32.mxu0 %vm1846_vm3, %v2313_v47 }
 0x7d6   : > { %4259 = vmatmul.mubr.msk.f32.vlgmr.msra.gmra.mrb[28].mxu0 %vm1846_vm3, %v2314_v29  ;;  %v4857_v62 = vpop.eup %4856 }
 0x7d7   : > { %4535 = vmatpush3.bf16.xpose.msk.msra.mxu0 %vm5568_vm2, %v4530_v49  ;;  %v2295_v55 = vpop.xlane.xlu0 %2294  ;;  %v2316_v48 = vmul.f32 %v4857_v62, %v5785_v15  ;;  %v4693_v49 = vpop.permute.xlu1 %4692 }
 0x7d8   : > { %4862 = vrcp.f32 %v2295_v55  ;;  %4538 = vmatprep.subr.msk.bf16.mxu0 %vm5568_vm2, %v4536_v3  ;;  %v4695_v41 = vunpack.i.h.bf16 %v4693_v49 }
 0x7da   : > { %v4859_v1 = vpop.eup %4858 }
 0x7db   : > { %v4688_v53 = vpop.permute.xlu0 %4687  ;;  %v2315_v34 = vmul.f32 %v4859_v1, %v5789_v44  ;;  %v4694_v44 = vunpack.i.l.bf16 %v4693_v49 }
 0x7dc   : > { %v4690_v0 = vunpack.i.h.bf16 %v4688_v53  ;;  %v4689_v8 = vunpack.i.l.bf16 %v4688_v53 }
 0x7dd   : > { %4261 = vmatprep.mubr.msk.f32.mxu0 %vm1846_vm3, %v2315_v34  ;;  %v4548_v19 = vpack.c.bf16 %v4695_v41, %v4694_v44 }
 0x7de   : > { %v4542_v12 = vpack.c.bf16 %v4690_v0, %v4689_v8  ;;  %4262 = vmatmul.mubr.msk.f32.gmra.mrb[30].mxu0 %vm1846_vm3, %v2316_v48  ;;  %v4861_v63 = vpop.eup %4860 }
 0x7df   : > { %4541 = vmatpush3.bf16.xpose.msk.msra.mxu0 %vm5568_vm2, %v4536_v3  ;;  %v2318_v15 = vmul.f32 %v4861_v63, %v5793_v9 }
 0x7e0   : > { %4544 = vmatprep.subr.msk.bf16.mxu0 %vm5568_vm2, %v4542_v12 }
 0x7e2   : > { %v4863_v46 = vpop.eup %4862 }
 0x7e3   : > { %v2317_v20 = vmul.f32 %v4863_v46, %v5797_v6  ;;  %v2483_v6 = vpop.permute.xlu0 %2482 }
 0x7e5   : > { %4264 = vmatprep.mubr.msk.f32.mxu0 %vm1846_vm3, %v2317_v20 }
 0x7e6   : > { %4265 = vmatmul.mubr.msk.f32.gmra.mrb[32].mxu0 %vm1846_vm3, %v2318_v15 }
 0x7e7   : > { %4547 = vmatpush3.bf16.xpose.msk.msra.mxu0 %vm5568_vm2, %v4542_v12  ;;  %v2487_v40 = vpop.permute.xlu0 %2486 }
 0x7e8   : > { %4550 = vmatprep.subr.msk.bf16.mxu0 %vm5568_vm2, %v4548_v19 }
 0x7eb   : > { %v2491_v29 = vpop.permute.xlu0 %2490 }
 0x7ef   : > { %4553 = vmatpush3.bf16.xpose.msk.msra.mxu0 %vm5568_vm2, %v4548_v19 }
 0x800   : > { %v2304_v38 = vpop.xlane.xlu1 %2303 }
 0x801   : > { %4864 = vrcp.f32 %v2304_v38 }
 0x804   : > { %v2301_v43 = vpop.xlane.xlu1 %2300 }
 0x805   : > { %4866 = vrcp.f32 %v2301_v43 }
 0x808   : > { %v2485_v42 = vpop.permute.xlu1 %2484 }
 0x80b   : > { %v4865_v9 = vpop.eup %4864 }
 0x80c   : > { %v2320_v25 = vmul.f32 %v4865_v9, %v5815_v31  ;;  %v2489_v47 = vpop.permute.xlu1 %2488 }
 0x80f   : > { %v4867_v54 = vpop.eup %4866 }
 0x810   : > { %v2319_v10 = vmul.f32 %v4867_v54, %v5821_v7  ;;  %v2493_v3 = vpop.permute.xlu1 %2492  ;;  %v2495_v7 = vpop.permute.xlu0 %2494 }
 0x812   : > { %4267 = vmatprep.mubr.msk.f32.mxu0 %vm1846_vm3, %v2319_v10 }
 0x813   : > { %4268 = vmatmul.mubr.msk.f32.gmra.mrb[34].mxu0 %vm1846_vm3, %v2320_v25 }
 0x814   : > { %4286 = vmatprep.mubr.msk.f32.mxu0 %vm1692_vm1, %v2483_v6  ;;  %v2497_v31 = vpop.permute.xlu1 %2496 }
 0x817   : > { %4287 = vmatmul.mubr.msk.f32.vlgmr.msra.gmra.mrb[36].mxu0 %vm1692_vm1, %v2485_v42 }
 0x818   : > { %4289 = vmatprep.mubr.msk.f32.mxu0 %vm1692_vm1, %v2487_v40 }
 0x81b   : > { %4290 = vmatmul.mubr.msk.f32.gmra.mrb[38].mxu0 %vm1692_vm1, %v2489_v47 }
 0x81c   : > { %4292 = vmatprep.mubr.msk.f32.mxu0 %vm1692_vm1, %v2491_v29 }
 0x81f   : > { %4293 = vmatmul.mubr.msk.f32.gmra.mrb[40].mxu0 %vm1692_vm1, %v2493_v3 }
 0x820   : > { %4295 = vmatprep.mubr.msk.f32.mxu0 %vm1692_vm1, %v2495_v7 }
 0x823   : > { %4296 = vmatmul.mubr.msk.f32.gmra.mrb[42].mxu0 %vm1692_vm1, %v2497_v31 }
 0x8a9   : > { %v5871_v55 = vpop.f32.mrb[28].mxu0 }
 0x8aa   : > { %v5873_v62 = vpop.f32.mrb[29].mxu0 }
 0x8b1   : > { %v5875_v1 = vpop.f32.mrb[30].mxu0 }
 0x8b2   : > { %v5877_v53 = vpop.f32.mrb[31].mxu0 }
 0x8b9   : > { %v5879_v34 = vpop.f32.mrb[32].mxu0 }
 0x8ba   : > { %v5881_v0 = vpop.f32.mrb[33].mxu0 }
 0x8e6   : > { %v5883_v8 = vpop.f32.mrb[34].mxu0 }
 0x8e7   : > { %v5885_v48 = vpop.f32.mrb[35].mxu0 }
 0x8ea   : > { %v4288_v12 = vpop.f32.mrb[36].mxu0 }
 0x8eb   : > { %v2612_v49 = vpop.f32.mrb[37].mxu0  ;;  %v2654_v63 = vsel %vm1846_vm3, %v4288_v12, -inf }
 0x8ec   : > { %2655 = vmax.xlane.f32.xlu1 %v2654_v63  ;;  %v2651_v46 = vsel %vm1846_vm3, %v2612_v49, -inf }
 0x8ed   : > { %2652 = vmax.xlane.f32.xlu0 %v2651_v46 }
 0x8ee   : > { %v4291_v41 = vpop.f32.mrb[38].mxu0 }
 0x8ef   : > { %v2622_v44 = vpop.f32.mrb[39].mxu0  ;;  %v2660_v20 = vsel %vm1846_vm3, %v4291_v41, -inf }
 0x8f0   : > { %v2657_v43 = vsel %vm1846_vm3, %v2622_v44, -inf }
 0x8f1   : > { %2661 = vmax.xlane.f32.xlu0 %v2660_v20 }
 0x8f2   : > { %v4294_v15 = vpop.f32.mrb[40].mxu0 }
 0x8f3   : > { %v2632_v19 = vpop.f32.mrb[41].mxu0  ;;  %v2666_v38 = vsel %vm1846_vm3, %v4294_v15, -inf }
 0x8f4   : > { %2667 = vmax.xlane.f32.xlu1 %v2666_v38  ;;  %v2663_v42 = vsel %vm1846_vm3, %v2632_v19, -inf }
 0x8f5   : > { %2658 = vmax.xlane.f32.xlu0 %v2657_v43 }
 0x8f6   : > { %v5892_v6 = vpop.f32.mrb[42].mxu0 }
 0x8f7   : > { %v5894_v9 = vpop.f32.mrb[43].mxu0  ;;  %v2672_v54 = vsel %vm1846_vm3, %v5892_v6, -inf }
 0x8f8   : > { %2673 = vmax.xlane.f32.xlu1 %v2672_v54  ;;  %v2669_v10 = vsel %vm1846_vm3, %v5894_v9, -inf }
 0x8f9   : > { %2664 = vmax.xlane.f32.xlu0 %v2663_v42 }
 0x8fd   : > { %2670 = vmax.xlane.f32.xlu0 %v2669_v10 }
 0x909   : > { %4702 = vrot.lane.b32.xlu1 %v5526_v21, %s4941_s16 }
 0x90d   : > { %4707 = vrot.lane.b32.xlu1 %v5536_v26, %s4941_s16 }
 0x911   : > { %4712 = vrot.lane.b32.xlu1 %v5547_v37, %s4941_s16 }
 0x913   : > { %4697 = vrot.lane.b32.xlu0 %v5516_v35, %s4941_s16  ;;  %s426_s16 = scalar_lea.vmem %s6192_s11, %s5032_s12 }
 0x915   : > { %4722 = vrot.lane.b32.xlu1 %v5580_v32, %s4942_s19 }
 0x917   : > { %4717 = vrot.lane.b32.xlu0 %v5572_v30, %s4942_s19 }
 0x979   : > { %v2656_v25 = vpop.xlane.xlu1 %2655 }
 0x97a   : > { %v2676_v40 = vsub.f32 %v4288_v12, %v2656_v25  ;;  %v2653_v47 = vpop.xlane.xlu0 %2652 }
 0x97b   : > { %v2675_v29 = vsub.f32 %v2612_v49, %v2653_v47 }
 0x97c   : > { %v2685_v3 = vmul.f32 1.442695, %v2676_v40 }
 0x97d   : > { %v2683_v7 = vmul.f32 1.442695, %v2675_v29 }
 0x97e   : > { %4868 = vpow2.f32 %v2685_v3  ;;  %v2662_v31 = vpop.xlane.xlu0 %2661 }
 0x97f   : > { %4870 = vpow2.f32 %v2683_v7  ;;  %v2678_v63 = vsub.f32 %v4291_v41, %v2662_v31 }
 0x981   : > { %v2689_v46 = vmul.f32 1.442695, %v2678_v63  ;;  %v2668_v20 = vpop.xlane.xlu1 %2667 }
 0x982   : > { %v2680_v38 = vsub.f32 %v4294_v15, %v2668_v20  ;;  %v2659_v43 = vpop.xlane.xlu0 %2658 }
 0x983   : > { %4872 = vpow2.f32 %v2689_v46  ;;  %v2677_v54 = vsub.f32 %v2622_v44, %v2659_v43 }
 0x984   : > { %v2693_v32 = vmul.f32 1.442695, %v2680_v38 }
 0x985   : > { %v2687_v42 = vmul.f32 1.442695, %v2677_v54  ;;  %v2674_v10 = vpop.xlane.xlu1 %2673 }
 0x986   : > { %v2665_v30 = vpop.xlane.xlu0 %2664 }
 0x987   : > { %4874 = vpow2.f32 %v2687_v42  ;;  %v2679_v12 = vsub.f32 %v2632_v19, %v2665_v30 }
 0x988   : > { %v5913_v25 = vpop.eup %4868  ;;  %4876 = vpow2.f32 %v2693_v32 }
 0x989   : > { %v5915_v49 = vpop.eup %4870  ;;  %v2691_v40 = vmul.f32 1.442695, %v2679_v12  ;;  %v4703_v47 = vpop.permute.xlu1 %4702  ;;  %v2702_v41 = vsel %vm1846_vm3, %v5913_v25, 0.0 }
 0x98a   : > { %2703 = vadd.xlane.f32.xlu1 %v2702_v41  ;;  %v2671_v15 = vpop.xlane.xlu0 %2670  ;;  %v2699_v44 = vsel %vm1846_vm3, %v5915_v49, 0.0  ;;  %v4705_v31 = vunpack.i.h.bf16 %v4703_v47  ;;  %v4704_v63 = vunpack.i.l.bf16 %v4703_v47 }
 0x98b   : > { %2700 = vadd.xlane.f32.xlu0 %v2699_v44  ;;  %4878 = vpow2.f32 %v2691_v40 }
 0x98c   : > { %v4558_v42 = vpack.c.bf16 %v4705_v31, %v4704_v63 }
 0x98d   : > { %v5921_v29 = vpop.eup %4872  ;;  %v4708_v19 = vpop.permute.xlu1 %4707 }
 0x98e   : > { %v4698_v3 = vpop.permute.xlu0 %4697  ;;  %v2708_v7 = vsel %vm1846_vm3, %v5921_v29, 0.0  ;;  %v4710_v30 = vunpack.i.h.bf16 %v4708_v19  ;;  %v4709_v12 = vunpack.i.l.bf16 %v4708_v19 }
 0x98f   : > { %v4700_v46 = vunpack.i.h.bf16 %v4698_v3  ;;  %v4699_v20 = vunpack.i.l.bf16 %v4698_v3  ;;  %2709 = vadd.xlane.f32.xlu1 %v2708_v7 }
 0x990   : > { %v4562_v44 = vpack.c.bf16 %v4710_v30, %v4709_v12  ;;  %v2681_v30 = vsub.f32 %v5894_v9, %v2671_v15 }
 0x991   : > { %v5925_v38 = vpop.eup %4874  ;;  %v4554_v43 = vpack.c.bf16 %v4700_v46, %v4699_v20  ;;  %v4713_v40 = vpop.permute.xlu1 %4712 }
 0x992   : > { %v2705_v54 = vsel %vm1846_vm3, %v5925_v38, 0.0  ;;  %v5929_v32 = vpop.eup %4876  ;;  %v4715_v3 = vunpack.i.h.bf16 %v4713_v40  ;;  %v4714_v7 = vunpack.i.l.bf16 %v4713_v40  ;;  %v4718_v46 = vpop.permute.xlu0 %4717 }
 0x993   : > { %2706 = vadd.xlane.f32.xlu0 %v2705_v54  ;;  %4555 = vmatprep.subr.bf16.mxu1 %v4554_v43  ;;  %v2714_v47 = vsel %vm1846_vm3, %v5929_v32, 0.0  ;;  %v4720_v63 = vunpack.i.h.bf16 %v4718_v46  ;;  %v4719_v20 = vunpack.i.l.bf16 %v4718_v46  ;;  %v2682_v54 = vsub.f32 %v5892_v6, %v2674_v10 }
 0x994   : > { %4557 = vmatpush3.bf16.msra.mxu1 %v4554_v43  ;;  %v4566_v31 = vpack.c.bf16 %v4715_v3, %v4714_v7 }
 0x995   : > { %4559 = vmatprep.subr.bf16.mxu1 %v4558_v42  ;;  %v5933_v41 = vpop.eup %4878  ;;  %v4570_v43 = vpack.c.bf16 %v4720_v63, %v4719_v20 }
 0x996   : > { %v2711_v19 = vsel %vm1846_vm3, %v5933_v41, 0.0 }
 0x997   : > { %2715 = vadd.xlane.f32.xlu0 %v2714_v47 }
 0x998   : > { %4561 = vmatpush3.bf16.msra.mxu1 %v4558_v42  ;;  %v2697_v42 = vmul.f32 1.442695, %v2682_v54 }
 0x999   : > { %4563 = vmatprep.subr.bf16.mxu1 %v4562_v44 }
 0x99a   : > { %4880 = vpow2.f32 %v2697_v42 }
 0x99b   : > { %2712 = vadd.xlane.f32.xlu0 %v2711_v19 }
 0x99c   : > { %4565 = vmatpush3.bf16.msra.mxu1 %v4562_v44 }
 0x99d   : > { %4567 = vmatprep.subr.bf16.mxu1 %v4566_v31 }
 0x9a0   : > { %4732 = vrot.lane.b32.xlu1 %v5594_v22, %s4942_s19  ;;  %4569 = vmatpush3.bf16.msra.mxu1 %v4566_v31  ;;  %v2695_v22 = vmul.f32 1.442695, %v2681_v30 }
 0x9a1   : > { %4572 = vmatprep.subr.msk.bf16.mxu1 %vm5568_vm2, %v4570_v43 }
 0x9a2   : > { %4882 = vpow2.f32 %v2695_v22 }
 0x9a4   : > { %2894 = vrot.lane.b32.xlu1 %v5603_v16, %s4942_s19 }
 0x9b1   : > { %4727 = vrot.lane.b32.xlu0 %v5586_v14, %s4942_s19  ;;  %v5955_v14 = vpop.eup %4880 }
 0x9b2   : > { %v5959_v16 = vpop.eup %4882 }
 0x9b5   : > { %2892 = vrot.lane.b32.xlu0 %v5553_v39, %s4942_s19  ;;  %v2720_v39 = vsel %vm1846_vm3, %v5955_v14, 0.0 }
 0x9b9   : > { %2896 = vrot.lane.b32.xlu0 %v5605_v27, %s4942_s19  ;;  %v2717_v27 = vsel %vm1846_vm3, %v5959_v16, 0.0 }
 0x9bd   : > { %2900 = vrot.lane.b32.xlu0 %v5613_v17, %s4942_s19  ;;  %v4723_v17 = vpop.permute.xlu1 %4722 }
 0x9be   : > { %v4725_v40 = vunpack.i.h.bf16 %v4723_v17  ;;  %v4724_v47 = vunpack.i.l.bf16 %v4723_v17 }
 0x9c1   : > { %2904 = vrot.lane.b32.xlu0 %v5621_v24, %s4942_s19 }
 0x9c8   : > { %2721 = vadd.xlane.f32.xlu1 %v2720_v39 }
 0x9cc   : > { %2718 = vadd.xlane.f32.xlu1 %v2717_v27 }
 0x9dd   : > { %2898 = vrot.lane.b32.xlu1 %v5611_v50, %s4942_s19 }
 0x9e1   : > { %2902 = vrot.lane.b32.xlu1 %v5619_v45, %s4942_s19 }
 0x9e5   : > { %2906 = vrot.lane.b32.xlu1 %v5627_v36, %s4942_s19  ;;  %v4576_v36 = vpack.c.bf16 %v4725_v40, %v4724_v47 }
 0xa17   : > { %v2704_v24 = vpop.xlane.xlu1 %2703 }
 0xa18   : > { %4884 = vrcp.f32 %v2704_v24  ;;  %v2701_v6 = vpop.xlane.xlu0 %2700 }
 0xa19   : > { %4886 = vrcp.f32 %v2701_v6 }
 0xa1c   : > { %v2710_v9 = vpop.xlane.xlu1 %2709 }
 0xa1d   : > { %4888 = vrcp.f32 %v2710_v9 }
 0xa20   : > { %v2707_v10 = vpop.xlane.xlu0 %2706 }
 0xa21   : > { %4890 = vrcp.f32 %v2707_v10 }
 0xa22   : > { %v4885_v15 = vpop.eup %4884 }
 0xa23   : > { %v4887_v12 = vpop.eup %4886  ;;  %v2732_v45 = vmul.f32 %v4885_v15, %v5913_v25 }
 0xa24   : > { %v2716_v50 = vpop.xlane.xlu0 %2715  ;;  %v2731_v44 = vmul.f32 %v4887_v12, %v5915_v49 }
 0xa25   : > { %4892 = vrcp.f32 %v2716_v50 }
 0xa26   : > { %4314 = vmatprep.mubr.msk.f32.mxu1 %vm1846_vm3, %v2731_v44 }
 0xa27   : > { %4315 = vmatmul.mubr.msk.f32.vlgmr.msra.gmra.mrb[44].mxu1 %vm1846_vm3, %v2732_v45  ;;  %v4889_v7 = vpop.eup %4888 }
 0xa28   : > { %4575 = vmatpush3.bf16.xpose.msk.msra.mxu1 %vm5568_vm2, %v4570_v43  ;;  %v2713_v3 = vpop.xlane.xlu0 %2712  ;;  %v2734_v63 = vmul.f32 %v4889_v7, %v5921_v29  ;;  %v4733_v43 = vpop.permute.xlu1 %4732 }
 0xa29   : > { %4894 = vrcp.f32 %v2713_v3  ;;  %4578 = vmatprep.subr.msk.bf16.mxu1 %vm5568_vm2, %v4576_v36  ;;  %v4735_v30 = vunpack.i.h.bf16 %v4733_v43 }
 0xa2b   : > { %v4891_v46 = vpop.eup %4890 }
 0xa2c   : > { %v4728_v19 = vpop.permute.xlu0 %4727  ;;  %v2733_v49 = vmul.f32 %v4891_v46, %v5925_v38  ;;  %v4734_v38 = vunpack.i.l.bf16 %v4733_v43  ;;  %v2895_v27 = vpop.permute.xlu1 %2894 }
 0xa2d   : > { %v4730_v25 = vunpack.i.h.bf16 %v4728_v19  ;;  %v4729_v31 = vunpack.i.l.bf16 %v4728_v19 }
 0xa2e   : > { %4317 = vmatprep.mubr.msk.f32.mxu1 %vm1846_vm3, %v2733_v49  ;;  %v4588_v39 = vpack.c.bf16 %v4735_v30, %v4734_v38 }
 0xa2f   : > { %v4582_v20 = vpack.c.bf16 %v4730_v25, %v4729_v31  ;;  %4318 = vmatmul.mubr.msk.f32.gmra.mrb[46].mxu1 %vm1846_vm3, %v2734_v63  ;;  %v4893_v54 = vpop.eup %4892 }
 0xa30   : > { %4581 = vmatpush3.bf16.xpose.msk.msra.mxu1 %vm5568_vm2, %v4576_v36  ;;  %v2736_v29 = vmul.f32 %v4893_v54, %v5929_v32  ;;  %v2893_v32 = vpop.permute.xlu0 %2892 }
 0xa31   : > { %4584 = vmatprep.subr.msk.bf16.mxu1 %vm5568_vm2, %v4582_v20 }
 0xa33   : > { %v4895_v42 = vpop.eup %4894 }
 0xa34   : > { %v2735_v22 = vmul.f32 %v4895_v42, %v5933_v41  ;;  %v2897_v15 = vpop.permute.xlu0 %2896 }
 0xa36   : > { %4320 = vmatprep.mubr.msk.f32.mxu1 %vm1846_vm3, %v2735_v22 }
 0xa37   : > { %4321 = vmatmul.mubr.msk.f32.gmra.mrb[48].mxu1 %vm1846_vm3, %v2736_v29 }
 0xa38   : > { %4587 = vmatpush3.bf16.xpose.msk.msra.mxu1 %vm5568_vm2, %v4582_v20  ;;  %v2901_v12 = vpop.permute.xlu0 %2900 }
 0xa39   : > { %4590 = vmatprep.subr.msk.bf16.mxu1 %vm5568_vm2, %v4588_v39 }
 0xa40   : > { %4593 = vmatpush3.bf16.xpose.msk.msra.mxu1 %vm5568_vm2, %v4588_v39 }
 0xa55   : > { %v2722_v17 = vpop.xlane.xlu1 %2721 }
 0xa56   : > { %4896 = vrcp.f32 %v2722_v17 }
 0xa59   : > { %v2719_v41 = vpop.xlane.xlu1 %2718 }
 0xa5a   : > { %4898 = vrcp.f32 %v2719_v41 }
 0xa5d   : > { %v2899_v23 = vpop.permute.xlu1 %2898 }
 0xa60   : > { %v4897_v24 = vpop.eup %4896 }
 0xa61   : > { %v2738_v10 = vmul.f32 %v4897_v24, %v5955_v14  ;;  %v2903_v40 = vpop.permute.xlu1 %2902 }
 0xa64   : > { %v4899_v6 = vpop.eup %4898 }
 0xa65   : > { %v2737_v9 = vmul.f32 %v4899_v6, %v5959_v16  ;;  %v2905_v16 = vpop.permute.xlu0 %2904  ;;  %v2907_v14 = vpop.permute.xlu1 %2906 }
 0xa67   : > { %4323 = vmatprep.mubr.msk.f32.mxu1 %vm1846_vm3, %v2737_v9 }
 0xa68   : > { %4324 = vmatmul.mubr.msk.f32.gmra.mrb[50].mxu1 %vm1846_vm3, %v2738_v10 }
 0xa69   : > { %4342 = vmatprep.mubr.msk.f32.mxu1 %vm1692_vm1, %v2893_v32 }
 0xa6c   : > { %4343 = vmatmul.mubr.msk.f32.vlgmr.msra.gmra.mrb[52].mxu1 %vm1692_vm1, %v2895_v27 }
 0xa6d   : > { %4345 = vmatprep.mubr.msk.f32.mxu1 %vm1692_vm1, %v2897_v15 }
 0xa70   : > { %4346 = vmatmul.mubr.msk.f32.gmra.mrb[54].mxu1 %vm1692_vm1, %v2899_v23 }
 0xa71   : > { %4348 = vmatprep.mubr.msk.f32.mxu1 %vm1692_vm1, %v2901_v12 }
 0xa74   : > { %4349 = vmatmul.mubr.msk.f32.gmra.mrb[56].mxu1 %vm1692_vm1, %v2903_v40 }
 0xa75   : > { %4351 = vmatprep.mubr.msk.f32.mxu1 %vm1692_vm1, %v2905_v16 }
 0xa78   : > { %4352 = vmatmul.mubr.msk.f32.gmra.mrb[58].mxu1 %vm1692_vm1, %v2907_v14 }
 0xafa   : > { %v6007_v47 = vpop.f32.mrb[44].mxu1 }
 0xafb   : > { %v6009_v50 = vpop.f32.mrb[45].mxu1 }
 0xb02   : > { %v6011_v44 = vpop.f32.mrb[46].mxu1 }
 0xb03   : > { %v6013_v45 = vpop.f32.mrb[47].mxu1 }
 0xb0a   : > { %v6015_v36 = vpop.f32.mrb[48].mxu1 }
 0xb0b   : > { %v6017_v3 = vpop.f32.mrb[49].mxu1 }
 0xb3b   : > { %v6019_v7 = vpop.f32.mrb[50].mxu1 }
 0xb3c   : > { %v6021_v46 = vpop.f32.mrb[51].mxu1 }
 0xb3f   : > { %v4344_v19 = vpop.f32.mrb[52].mxu1 }
 0xb40   : > { %v3022_v49 = vpop.f32.mrb[53].mxu1  ;;  %v3064_v25 = vsel %vm1846_vm3, %v4344_v19, -inf }
 0xb41   : > { %3065 = vmax.xlane.f32.xlu1 %v3064_v25  ;;  %v3061_v31 = vsel %vm1846_vm3, %v3022_v49, -inf }
 0xb42   : > { %3062 = vmax.xlane.f32.xlu0 %v3061_v31 }
 0xb43   : > { %v4347_v63 = vpop.f32.mrb[54].mxu1 }
 0xb44   : > { %v3032_v20 = vpop.f32.mrb[55].mxu1  ;;  %v3070_v43 = vsel %vm1846_vm3, %v4347_v63, -inf }
 0xb45   : > { %v3067_v38 = vsel %vm1846_vm3, %v3032_v20, -inf }
 0xb46   : > { %3071 = vmax.xlane.f32.xlu0 %v3070_v43 }
 0xb47   : > { %v4350_v54 = vpop.f32.mrb[56].mxu1 }
 0xb48   : > { %v3042_v42 = vpop.f32.mrb[57].mxu1  ;;  %v3076_v30 = vsel %vm1846_vm3, %v4350_v54, -inf }
 0xb49   : > { %3077 = vmax.xlane.f32.xlu1 %v3076_v30  ;;  %v3073_v27 = vsel %vm1846_vm3, %v3042_v42, -inf }
 0xb4a   : > { %3068 = vmax.xlane.f32.xlu0 %v3067_v38 }
 0xb4b   : > { %v4353_v22 = vpop.f32.mrb[58].mxu1 }
 0xb4c   : > { %v3052_v29 = vpop.f32.mrb[59].mxu1  ;;  %v3082_v39 = vsel %vm1846_vm3, %v4353_v22, -inf }
 0xb4d   : > { %3083 = vmax.xlane.f32.xlu1 %v3082_v39  ;;  %v3079_v17 = vsel %vm1846_vm3, %v3052_v29, -inf }
 0xb4e   : > { %3074 = vmax.xlane.f32.xlu0 %v3073_v27 }
 0xb52   : > { %3080 = vmax.xlane.f32.xlu0 %v3079_v17 }
 0xb5e   : > { %4742 = vrot.lane.b32.xlu1 %v5526_v21, %s4942_s19 }
 0xb68   : > { %4737 = vrot.lane.b32.xlu0 %v5516_v35, %s4942_s19 }
 0xbce   : > { %v3066_v41 = vpop.xlane.xlu1 %3065 }
 0xbcf   : > { %v3086_v32 = vsub.f32 %v4344_v19, %v3066_v41  ;;  %v3063_v24 = vpop.xlane.xlu0 %3062 }
 0xbd0   : > { %v3085_v6 = vsub.f32 %v3022_v49, %v3063_v24 }
 0xbd1   : > { %v3095_v9 = vmul.f32 1.442695, %v3086_v32 }
 0xbd2   : > { %v3093_v10 = vmul.f32 1.442695, %v3085_v6 }
 0xbd3   : > { %4900 = vpow2.f32 %v3095_v9  ;;  %v3072_v15 = vpop.xlane.xlu0 %3071 }
 0xbd4   : > { %4902 = vpow2.f32 %v3093_v10  ;;  %v3088_v23 = vsub.f32 %v4347_v63, %v3072_v15 }
 0xbd6   : > { %v3099_v12 = vmul.f32 1.442695, %v3088_v23  ;;  %v3078_v40 = vpop.xlane.xlu1 %3077 }
 0xbd7   : > { %v3090_v16 = vsub.f32 %v4350_v54, %v3078_v40  ;;  %v3069_v14 = vpop.xlane.xlu0 %3068 }
 0xbd8   : > { %4904 = vpow2.f32 %v3099_v12  ;;  %v3087_v25 = vsub.f32 %v3032_v20, %v3069_v14 }
 0xbd9   : > { %v3103_v21 = vmul.f32 1.442695, %v3090_v16 }
 0xbda   : > { %v3097_v31 = vmul.f32 1.442695, %v3087_v25  ;;  %v3084_v43 = vpop.xlane.xlu1 %3083 }
 0xbdb   : > { %4906 = vpow2.f32 %v3103_v21  ;;  %v3092_v35 = vsub.f32 %v4353_v22, %v3084_v43  ;;  %v3075_v19 = vpop.xlane.xlu0 %3074 }
 0xbdc   : > { %4908 = vpow2.f32 %v3097_v31  ;;  %v3089_v49 = vsub.f32 %v3042_v42, %v3075_v19 }
 0xbdd   : > { %v6035_v30 = vpop.eup %4900  ;;  %v3107_v38 = vmul.f32 1.442695, %v3092_v35 }
 0xbde   : > { %v6037_v39 = vpop.eup %4902  ;;  %v3101_v63 = vmul.f32 1.442695, %v3089_v49  ;;  %v3112_v54 = vsel %vm1846_vm3, %v6035_v30, 0.0  ;;  %v4743_v42 = vpop.permute.xlu1 %4742 }
 0xbdf   : > { %4910 = vpow2.f32 %v3107_v38  ;;  %3113 = vadd.xlane.f32.xlu1 %v3112_v54  ;;  %v3081_v20 = vpop.xlane.xlu0 %3080  ;;  %v3109_v27 = vsel %vm1846_vm3, %v6037_v39, 0.0  ;;  %v4745_v15 = vunpack.i.h.bf16 %v4743_v42  ;;  %v4744_v23 = vunpack.i.l.bf16 %v4743_v42 }
 0xbe0   : > { %4912 = vpow2.f32 %v3101_v63  ;;  %v3091_v22 = vsub.f32 %v3052_v29, %v3081_v20  ;;  %3110 = vadd.xlane.f32.xlu0 %v3109_v27 }
 0xbe1   : > { %v4598_v25 = vpack.c.bf16 %v4745_v15, %v4744_v23  ;;  %v482_v23 = vld [vmem:[%s6190_s9 + $0x18] sm:$0xff] }
 0xbe2   : > { %v6043_v17 = vpop.eup %4904  ;;  %v3105_v41 = vmul.f32 1.442695, %v3091_v22 }
 0xbe3   : > { %v4738_v32 = vpop.permute.xlu0 %4737  ;;  %v3118_v24 = vsel %vm1846_vm3, %v6043_v17, 0.0 }
 0xbe4   : > { %4914 = vpow2.f32 %v3105_v41  ;;  %v4740_v6 = vunpack.i.h.bf16 %v4738_v32  ;;  %v4739_v9 = vunpack.i.l.bf16 %v4738_v32  ;;  %3119 = vadd.xlane.f32.xlu1 %v3118_v24 }
 0xbe5   : > { %v6047_v10 = vpop.eup %4906 }
 0xbe6   : > { %v6049_v12 = vpop.eup %4908  ;;  %v4594_v29 = vpack.c.bf16 %v4740_v6, %v4739_v9  ;;  %v3124_v40 = vsel %vm1846_vm3, %v6047_v10, 0.0  ;;  %v480_v9 = vld [vmem:[%s6190_s9 + $0x8] sm:$0xff] }
 0xbe7   : > { %v3115_v16 = vsel %vm1846_vm3, %v6049_v12, 0.0 }
 0xbe8   : > { %3125 = vadd.xlane.f32.xlu1 %v3124_v40  ;;  %3116 = vadd.xlane.f32.xlu0 %v3115_v16 }
 0xbe9   : > { %v6055_v14 = vpop.eup %4910  ;;  %4595 = vmatprep.subr.bf16.mxu0 %v4594_v29 }
 0xbea   : > { %v6057_v21 = vpop.eup %4912  ;;  %4597 = vmatpush3.bf16.msra.mxu0 %v4594_v29  ;;  %v3130_v31 = vsel %vm1846_vm3, %v6055_v14, 0.0 }
 0xbeb   : > { %4599 = vmatprep.subr.bf16.mxu0 %v4598_v25  ;;  %v3121_v43 = vsel %vm1846_vm3, %v6057_v21, 0.0 }
 0xbec   : > { %3131 = vadd.xlane.f32.xlu1 %v3130_v31  ;;  %3122 = vadd.xlane.f32.xlu0 %v3121_v43 }
 0xbee   : > { %v6063_v35 = vpop.eup %4914  ;;  %4601 = vmatpush3.bf16.msra.mxu0 %v4598_v25 }
 0xbef   : > { %v3127_v19 = vsel %vm1846_vm3, %v6063_v35, 0.0 }
 0xbf0   : > { %3128 = vadd.xlane.f32.xlu1 %v3127_v19 }
 0xc01   : > { %4752 = vrot.lane.b32.xlu1 %v5547_v37, %s4942_s19 }
 0xc02   : > { %4747 = vrot.lane.b32.xlu0 %v5536_v26, %s4942_s19 }
 0xc05   : > { %3312 = vrot.lane.b32.xlu1 %v5871_v55, %s4943_s20 }
 0xc06   : > { %3310 = vrot.lane.b32.xlu0 %v5873_v62, %s4943_s20 }
 0xc09   : > { %3344 = vrot.lane.b32.xlu1 %v6007_v47, %s4944_s21 }
 0xc0a   : > { %3342 = vrot.lane.b32.xlu0 %v6009_v50, %s4944_s21 }
 0xc0d   : > { %3316 = vrot.lane.b32.xlu1 %v5875_v1, %s4943_s20 }
 0xc0e   : > { %3314 = vrot.lane.b32.xlu0 %v5877_v53, %s4943_s20 }
 0xc11   : > { %3348 = vrot.lane.b32.xlu1 %v6011_v44, %s4944_s21 }
 0xc12   : > { %3346 = vrot.lane.b32.xlu0 %v6013_v45, %s4944_s21 }
 0xc15   : > { %3320 = vrot.lane.b32.xlu1 %v5879_v34, %s4943_s20 }
 0xc16   : > { %3318 = vrot.lane.b32.xlu0 %v5881_v0, %s4943_s20 }
 0xc19   : > { %3352 = vrot.lane.b32.xlu1 %v6015_v36, %s4944_s21 }
 0xc1a   : > { %3350 = vrot.lane.b32.xlu0 %v6017_v3, %s4944_s21 }
 0xc1d   : > { %3324 = vrot.lane.b32.xlu1 %v5883_v8, %s4943_s20 }
 0xc1e   : > { %3322 = vrot.lane.b32.xlu0 %v5885_v48, %s4943_s20 }
 0xc21   : > { %3356 = vrot.lane.b32.xlu1 %v6019_v7, %s4944_s21 }
 0xc22   : > { %3354 = vrot.lane.b32.xlu0 %v6021_v46, %s4944_s21 }
 0xc6c   : > { %v3114_v26 = vpop.xlane.xlu1 %3113 }
 0xc6d   : > { %v3111_v37 = vpop.xlane.xlu0 %3110 }
 0xc6e   : > { %4916 = vrcp.f32 %v3111_v37 }
 0xc6f   : > { %4918 = vrcp.f32 %v3114_v26 }
 0xc71   : > { %v3120_v55 = vpop.xlane.xlu1 %3119 }
 0xc75   : > { %v3126_v62 = vpop.xlane.xlu1 %3125  ;;  %v3117_v1 = vpop.xlane.xlu0 %3116 }
 0xc76   : > { %4920 = vrcp.f32 %v3117_v1 }
 0xc77   : > { %4922 = vrcp.f32 %v3120_v55 }
 0xc78   : > { %v4917_v53 = vpop.eup %4916 }
 0xc79   : > { %v3132_v34 = vpop.xlane.xlu1 %3131  ;;  %v3123_v0 = vpop.xlane.xlu0 %3122  ;;  %v3141_v47 = vmul.f32 %v4917_v53, %v6037_v39 }
 0xc7a   : > { %4924 = vrcp.f32 %v3123_v0  ;;  %v4919_v49 = vpop.eup %4918 }
 0xc7b   : > { %4370 = vmatprep.mubr.msk.f32.mxu0 %vm1846_vm3, %v3141_v47  ;;  %4926 = vrcp.f32 %v3126_v62  ;;  %v3142_v39 = vmul.f32 %v4919_v49, %v6035_v30 }
 0xc7d   : > { %v3129_v8 = vpop.xlane.xlu1 %3128  ;;  %v4748_v48 = vpop.permute.xlu0 %4747 }
 0xc7e   : > { %v4750_v50 = vunpack.i.h.bf16 %v4748_v48  ;;  %v4749_v44 = vunpack.i.l.bf16 %v4748_v48  ;;  %4928 = vrcp.f32 %v3129_v8 }
 0xc7f   : > { %4930 = vrcp.f32 %v3132_v34 }
 0xc80   : > { %v4602_v45 = vpack.c.bf16 %v4750_v50, %v4749_v44  ;;  %v4921_v38 = vpop.eup %4920 }
 0xc81   : > { %v4753_v36 = vpop.permute.xlu1 %4752  ;;  %v4923_v63 = vpop.eup %4922  ;;  %v3143_v54 = vmul.f32 %v4921_v38, %v6049_v12 }
 0xc82   : > { %v4755_v3 = vunpack.i.h.bf16 %v4753_v36  ;;  %v4754_v7 = vunpack.i.l.bf16 %v4753_v36  ;;  %4603 = vmatprep.subr.bf16.mxu0 %v4602_v45  ;;  %v3144_v27 = vmul.f32 %v4923_v63, %v6043_v17  ;;  %v479_v17 = vld [vmem:[%s6190_s9] sm:$0xff]  ;;  %v3311_v19 = vpop.permute.xlu0 %3310 }
 0xc83   : > { %4605 = vmatpush3.bf16.msra.mxu0 %v4602_v45  ;;  %v4610_v15 = vpack.c.bf16 %v480_v9, %v479_v17  ;;  %v3398_v36 = vsel %vm1692_vm1, %v5737_v56, %v3311_v19 }
 0xc84   : > { %v4606_v46 = vpack.c.bf16 %v4755_v3, %v4754_v7  ;;  %v4925_v20 = vpop.eup %4924 }
 0xc85   : > { %v4927_v22 = vpop.eup %4926  ;;  %v3145_v42 = vmul.f32 %v4925_v20, %v6057_v21 }
 0xc86   : > { %4607 = vmatprep.subr.bf16.mxu0 %v4606_v46  ;;  %v3146_v30 = vmul.f32 %v4927_v22, %v6047_v10  ;;  %v481_v10 = vld [vmem:[%s6190_s9 + $0x10] sm:$0xff]  ;;  %v3343_v37 = vpop.permute.xlu0 %3342 }
 0xc87   : > { %4609 = vmatpush3.bf16.msra.mxu0 %v4606_v46  ;;  %v4614_v12 = vpack.c.bf16 %v482_v23, %v481_v10  ;;  %v3407_v46 = vsel %vm3406_vm4, %v3398_v36, %v3343_v37 }
 0xc88   : > { %v4929_v41 = vpop.eup %4928  ;;  %4611 = vmatprep.subr.bf16.mxu0 %v4610_v15 }
 0xc89   : > { %v4931_v32 = vpop.eup %4930  ;;  %v3147_v24 = vmul.f32 %v4929_v41, %v6063_v35  ;;  %v3313_v35 = vpop.permute.xlu1 %3312 }
 0xc8a   : > { %4371 = vmatmul.mubr.msk.f32.vlgmr.msra.gmra.mrb[44].mxu0 %vm1846_vm3, %v3142_v39  ;;  %v3148_v6 = vmul.f32 %v4931_v32, %v6055_v14  ;;  %v3315_v62 = vpop.permute.xlu0 %3314  ;;  %v3399_v7 = vsel %vm1692_vm1, %v5735_v13, %v3313_v35 }
 0xc8b   : > { %4373 = vmatprep.mubr.msk.f32.mxu0 %vm1846_vm3, %v3143_v54  ;;  %4613 = vmatpush3.bf16.msra.mxu0 %v4610_v15  ;;  %v3400_v54 = vsel %vm1692_vm1, %v5741_v4, %v3315_v62 }
 0xc8c   : > { %4615 = vmatprep.subr.bf16.mxu0 %v4614_v12 }
 0xc8d   : > { %v3345_v26 = vpop.permute.xlu1 %3344 }
 0xc8e   : > { %4374 = vmatmul.mubr.msk.f32.gmra.mrb[46].mxu0 %vm1846_vm3, %v3144_v27  ;;  %v3347_v53 = vpop.permute.xlu0 %3346  ;;  %v3408_v38 = vsel %vm3406_vm4, %v3399_v7, %v3345_v26 }
 0xc8f   : > { %4376 = vmatprep.mubr.msk.f32.mxu0 %vm1846_vm3, %v3145_v42  ;;  %4617 = vmatpush3.bf16.msra.mxu0 %v4614_v12  ;;  %v3409_v20 = vsel %vm3406_vm4, %v3400_v54, %v3347_v53 }
 0xc91   : > { %v3317_v55 = vpop.permute.xlu1 %3316 }
 0xc92   : > { %4377 = vmatmul.mubr.msk.f32.gmra.mrb[48].mxu0 %vm1846_vm3, %v3146_v30  ;;  %v3319_v0 = vpop.permute.xlu0 %3318  ;;  %v3401_v13 = vsel %vm1692_vm1, %v5739_v33, %v3317_v55 }
 0xc93   : > { %4379 = vmatprep.mubr.msk.f32.mxu0 %vm1846_vm3, %v3147_v24  ;;  %v3402_v4 = vsel %vm1692_vm1, %v5745_v28, %v3319_v0 }
 0xc95   : > { %v3349_v1 = vpop.permute.xlu1 %3348 }
 0xc96   : > { %4380 = vmatmul.mubr.msk.f32.gmra.mrb[50].mxu0 %vm1846_vm3, %v3148_v6  ;;  %v3351_v8 = vpop.permute.xlu0 %3350  ;;  %v3410_v22 = vsel %vm3406_vm4, %v3401_v13, %v3349_v1 }
 0xc97   : > { %v3411_v32 = vsel %vm3406_vm4, %v3402_v4, %v3351_v8 }
 0xc99   : > { %v3321_v34 = vpop.permute.xlu1 %3320 }
 0xc9a   : > { %v3323_v50 = vpop.permute.xlu0 %3322  ;;  %v3403_v33 = vsel %vm1692_vm1, %v5743_v57, %v3321_v34 }
 0xc9b   : > { %v3404_v28 = vsel %vm1692_vm1, %v5749_v18, %v3323_v50  ;;  %v3811_v18 = vld [vmem:[%s6191_s10] ss:$0 sm:$0xff] }
 0xc9d   : > { %v3353_v47 = vpop.permute.xlu1 %3352 }
 0xc9e   : > { %v3355_v45 = vpop.permute.xlu0 %3354  ;;  %v3412_v6 = vsel %vm3406_vm4, %v3403_v33, %v3353_v47 }
 0xc9f   : > { %v3413_v15 = vsel %vm3406_vm4, %v3404_v28, %v3355_v45 }
 0xca1   : > { %v3325_v48 = vpop.permute.xlu1 %3324 }
 0xca2   : > { %v3405_v57 = vsel %vm1692_vm1, %v5747_v60, %v3325_v48 }
 0xca5   : > { %v3357_v44 = vpop.permute.xlu1 %3356 }
 0xca6   : > { %v3414_v12 = vsel %vm3406_vm4, %v3405_v57, %v3357_v44 }
 0xd5d   : > { %v4372_v29 = vpop.f32.mrb[44].mxu0 }
 0xd5e   : > { %3376 = vrot.lane.b32.xlu1 %v4372_v29, %s4945_s29  ;;  %v3263_v40 = vpop.f32.mrb[45].mxu0 }
 0xd5f   : > { %3374 = vrot.lane.b32.xlu0 %v3263_v40, %s4945_s29 }
 0xd61   : > { %v4375_v16 = vpop.f32.mrb[46].mxu0 }
 0xd62   : > { %3380 = vrot.lane.b32.xlu1 %v4375_v16, %s4945_s29  ;;  %v3273_v14 = vpop.f32.mrb[47].mxu0 }
 0xd63   : > { %3378 = vrot.lane.b32.xlu0 %v3273_v14, %s4945_s29 }
 0xd65   : > { %v4378_v25 = vpop.f32.mrb[48].mxu0 }
 0xd66   : > { %3384 = vrot.lane.b32.xlu1 %v4378_v25, %s4945_s29  ;;  %v3283_v21 = vpop.f32.mrb[49].mxu0 }
 0xd67   : > { %3382 = vrot.lane.b32.xlu0 %v3283_v21, %s4945_s29 }
 0xd69   : > { %v4381_v31 = vpop.f32.mrb[50].mxu0 }
 0xd6a   : > { %3388 = vrot.lane.b32.xlu1 %v4381_v31, %s4945_s29  ;;  %v3293_v43 = vpop.f32.mrb[51].mxu0 }
 0xd6b   : > { %3386 = vrot.lane.b32.xlu0 %v3293_v43, %s4945_s29 }
 0xdd0   : > { %v3377_v3 = vpop.permute.xlu1 %3376 }
 0xdd1   : > { %v3375_v49 = vpop.permute.xlu0 %3374  ;;  %v3417_v63 = vsel %vm3415_vm5, %v3408_v38, %v3377_v3 }
 0xdd2   : > { %v3416_v39 = vsel %vm3415_vm5, %v3407_v46, %v3375_v49 }
 0xdd3   : > { %4390 = vmatprep.mubr.msk.f32.mxu0 %vm488_vm0, %v3416_v39 }
 0xdd4   : > { %4391 = vmatmul.mubr.msk.f32.vlgmr.msra.gmra.mrb[52].mxu0 %vm488_vm0, %v3417_v63  ;;  %v3381_v56 = vpop.permute.xlu1 %3380 }
 0xdd5   : > { %v3379_v27 = vpop.permute.xlu0 %3378  ;;  %v3419_v41 = vsel %vm3415_vm5, %v3410_v22, %v3381_v56 }
 0xdd6   : > { %v3418_v42 = vsel %vm3415_vm5, %v3409_v20, %v3379_v27 }
 0xdd7   : > { %4393 = vmatprep.mubr.msk.f32.mxu0 %vm488_vm0, %v3418_v42 }
 0xdd8   : > { %4394 = vmatmul.mubr.msk.f32.gmra.mrb[54].mxu0 %vm488_vm0, %v3419_v41  ;;  %v3385_v30 = vpop.permute.xlu1 %3384 }
 0xdd9   : > { %v3383_v24 = vpop.permute.xlu0 %3382  ;;  %v3421_v9 = vsel %vm3415_vm5, %v3412_v6, %v3385_v30 }
 0xdda   : > { %v3420_v17 = vsel %vm3415_vm5, %v3411_v32, %v3383_v24 }
 0xddb   : > { %4396 = vmatprep.mubr.msk.f32.mxu0 %vm488_vm0, %v3420_v17 }
 0xddc   : > { %4397 = vmatmul.mubr.msk.f32.gmra.mrb[56].mxu0 %vm488_vm0, %v3421_v9  ;;  %v3389_v10 = vpop.permute.xlu1 %3388 }
 0xddd   : > { %v3387_v23 = vpop.permute.xlu0 %3386  ;;  %v3423_v40 = vsel %vm3415_vm5, %v3414_v12, %v3389_v10 }
 0xdde   : > { %v3422_v29 = vsel %vm3415_vm5, %v3413_v15, %v3387_v23 }
 0xddf   : > { %4399 = vmatprep.mubr.msk.f32.mxu0 %vm488_vm0, %v3422_v29 }
 0xde0   : > { %4400 = vmatmul.mubr.msk.f32.gmra.mrb[58].mxu0 %vm488_vm0, %v3423_v40 }
 0xea7   : > { %v4392_v16 = vpop.f32.mrb[52].mxu0 }
 0xea8   : > { %v3526_v14 = vadd.f32 %v4392_v16, %v3811_v18  ;;  %v3520_v60 = vpop.f32.mrb[53].mxu0 }
 0xea9   : > { %v3521_v25 = vadd.f32 %v3811_v18, %v3520_v60 }
 0xeaa   : > { %v3560_v21 = vadd.f32 %v3526_v14, %v5106_v52 }
 0xeab   : > { %v3559_v31 = vadd.f32 %v3521_v25, %v5104_v51  ;;  %v4395_v43 = vpop.f32.mrb[54].mxu0 }
 0xeac   : > { %3568 = vst.msk [vmem:[%s426_s16 + $0x8] sm:$0xff] %vm488_vm0, %v3560_v21  ;;  %v3536_v35 = vadd.f32 %v4395_v43, %v3811_v18  ;;  %v3530_v19 = vpop.f32.mrb[55].mxu0 }
 0xead   : > { %3567 = vst.msk [vmem:[%s426_s16] sm:$0xff] %vm488_vm0, %v3559_v31  ;;  %v3531_v26 = vadd.f32 %v3811_v18, %v3530_v19 }
 0xeae   : > { %v3562_v37 = vadd.f32 %v3536_v35, %v5116_v61 }
 0xeaf   : > { %v3561_v55 = vadd.f32 %v3531_v26, %v5110_v58  ;;  %v4398_v62 = vpop.f32.mrb[56].mxu0 }
 0xeb0   : > { %3570 = vst.msk [vmem:[%s426_s16 + $0x18] sm:$0xff] %vm488_vm0, %v3562_v37  ;;  %v3546_v1 = vadd.f32 %v4398_v62, %v3811_v18  ;;  %v3540_v53 = vpop.f32.mrb[57].mxu0 }
 0xeb1   : > { %3569 = vst.msk [vmem:[%s426_s16 + $0x10] sm:$0xff] %vm488_vm0, %v3561_v55  ;;  %v3541_v51 = vadd.f32 %v3811_v18, %v3540_v53 }
 0xeb2   : > { %v3564_v52 = vadd.f32 %v3546_v1, %v5127_v5 }
 0xeb3   : > { %v3563_v34 = vadd.f32 %v3541_v51, %v5112_v59  ;;  %v4401_v0 = vpop.f32.mrb[58].mxu0 }
 0xeb4   : > { %3572 = vst.msk [vmem:[%s426_s16 + $0x28] sm:$0xff] %vm488_vm0, %v3564_v52  ;;  %v3556_v47 = vadd.f32 %v4401_v0, %v3811_v18  ;;  %v3550_v8 = vpop.f32.mrb[59].mxu0 }
 0xeb5   : > { %3571 = vst.msk [vmem:[%s426_s16 + $0x20] sm:$0xff] %vm488_vm0, %v3563_v34  ;;  %v3551_v58 = vadd.f32 %v3811_v18, %v3550_v8 }
 0xeb6   : > { %v3566_v61 = vadd.f32 %v3556_v47, %v5135_v11 }
 0xeb7   : > { %v3565_v48 = vadd.f32 %v3551_v58, %v5122_v2 }
 0xeb8   : > { %3574 = vst.msk [vmem:[%s426_s16 + $0x38] sm:$0xff] %vm488_vm0, %v3566_v61 }
 0xeb9   : > { %3573 = vst.msk [vmem:[%s426_s16 + $0x30] sm:$0xff] %vm488_vm0, %v3565_v48 }
 0xeba PF: > { %s21_s17 = sadd.s32 1, %s4938_s17  }
 0xebb   : > { %p18_p4 = scmp.ge.s32.totalorder %s21_s17, 4  }
 0xebd   :  { %20 = sbr.rel (!%p18_p4) target bundleno = 1 (0x1), region = 100 }

</bundles_post_ra>
